<compile_context>
chip_gen: v5e
topology: v5e:2x2
jax: 0.10.0
libtpu: 0.0.40
codegen_flags: <defaults>
</compile_context>

<pallas_src>
import math

import jax
import jax.numpy as jnp
from jax.experimental import pallas as pl
from jax.experimental.pallas import tpu as pltpu


def _round_up(v, m):
    return -(-v // m) * m


# ----------------------------------------------------------------------------
# Kernels
# ----------------------------------------------------------------------------

def _channel_mix(ft, wr, wi, bt):
    """Complex per-mode channel mixing on the VPU.

    ft     : (bt*Cin, 2*Kp) f32   [real | imag] spectrum of the batch tile
    wr, wi : (Cout, Cin, Kp) f32  spectral weights
    returns (mr, mi) : (bt*Cout, Kp) f32

    Statically unrolled loop over Cin keeps live intermediates at (bt, Cout, Kp)
    instead of materialising a rank-4 (bt, Cout, Cin, Kp) broadcast.
    """
    cout, cin, kp = wr.shape
    ftr = ft[:, :kp].reshape(bt, cin, kp)
    fti = ft[:, kp:].reshape(bt, cin, kp)
    mr = jnp.zeros((bt, cout, kp), jnp.float32)
    mi = jnp.zeros((bt, cout, kp), jnp.float32)
    for i in range(cin):                       # static trip count (Cin known at trace time)
        fr = ftr[:, i, :][:, None, :]          # (bt, 1, Kp)
        fi = fti[:, i, :][:, None, :]
        wri = wr[:, i, :][None]                # (1, Cout, Kp)
        wii = wi[:, i, :][None]
        mr = mr + fr * wri - fi * wii
        mi = mi + fr * wii + fi * wri
    return mr.reshape(bt * cout, kp), mi.reshape(bt * cout, kp)


def _fused_kernel(x_ref, vf_ref, wr_ref, wi_ref, vi_ref, o_ref, m_buf):
    """Single-pass kernel: forward transform + channel mix + inverse transform.

    x_ref : (bt*Cin, Pp)     bf16  batch tile (batch folded into the MXU M dim)
    vf_ref: (Pp, 2*Kp)       bf16  fused forward Vandermonde [Re | Im] of exp(-i*phase)/sqrt(NxNy)
    w*    : (Cout, Cin, Kp)  f32   spectral weights (w1 ++ w2 along kx, zero-padded modes)
    vi_ref: (2*Kp, Pp)       bf16  fused inverse Vandermonde [Re ; -Im] of exp(+i*phase)/sqrt(NxNy)
    o_ref : (bt*Cout, Pp)    f32   real output (single unmasked lane-dense store)
    m_buf : (bt*Cout, 2*Kp)  bf16  scratch holding the packed mixed spectrum [Re | Im]
    """
    cout, cin, kp = wr_ref.shape
    bt = x_ref.shape[0] // cin

    # Forward non-uniform transform: ONE wide bf16 matmul (N = 2*Kp), f32 accumulation.
    ft = jnp.dot(x_ref[...], vf_ref[...], preferred_element_type=jnp.float32)

    mr, mi = _channel_mix(ft, wr_ref[...], wi_ref[...], bt)
    m_buf[:, :kp] = mr.astype(jnp.bfloat16)
    m_buf[:, kp:] = mi.astype(jnp.bfloat16)

    # Inverse transform, real part only: ONE matmul with K = 2*Kp
    # ([mr | mi] @ [Re(V_i) ; -Im(V_i)] = Re((mr + i*mi) @ V_i)).
    o_ref[...] = jnp.dot(m_buf[...], vi_ref[...],
                         preferred_element_type=jnp.float32).astype(o_ref.dtype)


def _fwd_mix_kernel(x_ref, vf_ref, wr_ref, wi_ref, m_ref, ft_acc):
    """Two-phase path, phase 1: forward transform as a P-reduction + channel mix.

    Grid = (batch tiles, P tiles); the P axis is an 'arbitrary' reduction axis.
    x_ref : (bt*Cin, tp) bf16, vf_ref : (tp, 2*Kp) bf16, w* : (Cout, Cin, Kp) f32
    m_ref : (bt*Cout, 2*Kp) bf16 output (written only on the last P step)
    ft_acc: (bt*Cin, 2*Kp) f32 VMEM accumulator.
    """
    cout, cin, kp = wr_ref.shape
    bt = x_ref.shape[0] // cin
    p = pl.program_id(1)

    @pl.when(p == 0)
    def _():
        ft_acc[...] = jnp.zeros_like(ft_acc)

    ft_acc[...] += jnp.dot(x_ref[...], vf_ref[...],
                           preferred_element_type=jnp.float32)

    @pl.when(p == pl.num_programs(1) - 1)
    def _():
        mr, mi = _channel_mix(ft_acc[...], wr_ref[...], wi_ref[...], bt)
        m_ref[:, :kp] = mr.astype(m_ref.dtype)
        m_ref[:, kp:] = mi.astype(m_ref.dtype)


def _inverse_kernel(m_ref, vi_ref, o_ref):
    """Two-phase path, phase 2: inverse transform tiled over P (both axes parallel)."""
    o_ref[...] = jnp.dot(m_ref[...], vi_ref[...],
                         preferred_element_type=jnp.float32).astype(o_ref.dtype)


# ----------------------------------------------------------------------------
# Wrapper glue
# ----------------------------------------------------------------------------

def _vmem_budget_bytes():
    """Usable VMEM budget: physical capacity minus ~25% headroom for compiler scratch
    and the pipeline's internal buffers (≈96 MiB on 128 MiB parts, ≈48 MiB on v7x)."""
    try:
        cap = int(pltpu.get_tpu_info().vmem_capacity_bytes)
    except Exception:
        cap = 64 * 2**20        # conservative default (v7x per-TensorCore VMEM)
    return max(16 * 2**20, int(cap * 0.75))


def _const_spec(shape, single_buffer):
    """BlockSpec for a grid-invariant operand; single-buffered when supported."""
    idx = lambda *_: (0,) * len(shape)
    if single_buffer:
        return pl.BlockSpec(shape, idx, pipeline_mode=pl.Buffered(1))
    return pl.BlockSpec(shape, idx)


def _pick_batch_tile(batch, cin, cout, per_b_bytes, avail_bytes, max_rows=1024):
    """Largest divisor of `batch` whose tiles are sublane-aligned (16 rows for the bf16
    matmul LHS, 8 for the f32 output) and fit the VMEM / row budget.  Prefers a >=2-step
    grid so the 'parallel' batch axis can shard across TensorCores (v7x megacore)."""
    fitting = []
    for bt in range(batch, 0, -1):
        if batch % bt:
            continue
        aligned = (bt == batch) or ((bt * cin) % 16 == 0 and (bt * cout) % 8 == 0)
        fits = (bt * per_b_bytes <= avail_bytes) and (bt * max(cin, cout) <= max_rows)
        if aligned and fits:
            fitting.append(bt)
    if not fitting:
        return 1                     # last resort; layout may be masked but stays correct
    multi = [bt for bt in fitting if batch // bt >= 2]
    return multi[0] if multi else fitting[0]


def precompute_transform(x_pos, y_pos, modes1, modes2):
    """Builds the fused bf16 Vandermonde operands once per (x_pos, y_pos, modes).
    Hoist/cache this across forward calls — it is pure setup, not per-step compute."""
    nx, ny = x_pos.shape[0], y_pos.shape[0]
    m1, m2 = modes1, modes2
    k = 2 * m1 * m2
    p = nx * ny
    kp = _round_up(k, 128)           # lane-dense mode axis (zero-padded modes)
    pp = _round_up(p, 128)           # lane-dense spatial axis

    kx = jnp.concatenate([jnp.arange(m1), jnp.arange(-m1, 0)]).astype(jnp.float32)
    ky = jnp.arange(m2).astype(jnp.float32)
    phase = (kx[:, None, None, None] * x_pos[None, None, :, None]
             + ky[None, :, None, None] * y_pos[None, None, None, :])     # (2m1, m2, Nx, Ny)
    phase = phase.reshape(k, p)
    norm = 1.0 / math.sqrt(nx * ny)
    cosp = jnp.cos(phase) * norm
    sinp = jnp.sin(phase) * norm

    # Forward V_f = exp(-i*phase)*norm: fused [Re | Im] along the mode axis, shape (Pp, 2*Kp).
    vf = jnp.zeros((pp, 2 * kp), jnp.float32)
    vf = vf.at[:p, :k].set(cosp.T).at[:p, kp:kp + k].set(-sinp.T)
    # Inverse V_i = exp(+i*phase)*norm: fused [Re ; -Im], shape (2*Kp, Pp), so that
    # [mr | mi] @ vi = mr @ Re(V_i) - mi @ Im(V_i) = Re((mr + i*mi) @ V_i).
    vi = jnp.zeros((2 * kp, pp), jnp.float32)
    vi = vi.at[:k, :p].set(cosp).at[kp:kp + k, :p].set(-sinp)
    return vf.astype(jnp.bfloat16), vi.astype(jnp.bfloat16), kp, pp


def _pack_weights(w1_re, w1_im, w2_re, w2_im, kp):
    """w1 covers kx = 0..m1-1, w2 covers kx = -m1..-1 (concat along kx), zero-pad to Kp."""
    cin, cout, m1, m2 = w1_re.shape
    k = 2 * m1 * m2
    w_re = jnp.concatenate([w1_re, w2_re], axis=2).reshape(cin, cout, k)
    w_im = jnp.concatenate([w1_im, w2_im], axis=2).reshape(cin, cout, k)
    w_re = jnp.pad(jnp.transpose(w_re, (1, 0, 2)), ((0, 0), (0, 0), (0, kp - k)))
    w_im = jnp.pad(jnp.transpose(w_im, (1, 0, 2)), ((0, 0), (0, 0), (0, kp - k)))
    return w_re.astype(jnp.float32), w_im.astype(jnp.float32)   # (Cout, Cin, Kp)


def _run_fused(x2d, vf, vi, w_re, w_im, bt, pp, kp, budget):
    """Single-kernel path: used when all operands fit the VMEM budget."""
    cout, cin, _ = w_re.shape
    batch = x2d.shape[0] // cin
    grid = (batch // bt,)

    const_bytes_single = vf.size * 2 + vi.size * 2 + (w_re.size + w_im.size) * 4
    tile_bytes = (2 * bt * cin * pp * 2        # x tile, bf16, double buffered
                  + 2 * bt * cout * pp * 4     # out tile, f32, double buffered
                  + bt * cout * 2 * kp * 2)    # mixed-spectrum scratch, bf16

    def run(single):
        const_bytes = const_bytes_single * (1 if single else 2)
        vmem_limit = min(budget, max(32 * 2**20, int(1.25 * (const_bytes + tile_bytes))))
        return pl.pallas_call(
            _fused_kernel,
            out_shape=jax.ShapeDtypeStruct((batch * cout, pp), jnp.float32),
            grid=grid,
            in_specs=[
                pl.BlockSpec((bt * cin, pp), lambda b: (b, 0)),
                _const_spec((pp, 2 * kp), single),
                _const_spec((cout, cin, kp), single),
                _const_spec((cout, cin, kp), single),
                _const_spec((2 * kp, pp), single),
            ],
            out_specs=pl.BlockSpec((bt * cout, pp), lambda b: (b, 0)),
            scratch_shapes=[pltpu.VMEM((bt * cout, 2 * kp), jnp.bfloat16)],
            compiler_params=pltpu.CompilerParams(
                dimension_semantics=("parallel",),
                vmem_limit_bytes=vmem_limit,
            ),
        )(x2d, vf, w_re, w_im, vi)

    try:
        return run(single=True)
    except Exception:
        # Fallback for Pallas builds without per-operand buffer counts; the VMEM limit is
        # recomputed for double-buffered constants inside run().  Genuine errors re-surface
        # (uncaught) on this second attempt.
        return run(single=False)


def _run_two_phase(x2d, vf, vi, w_re, w_im, bt, pp, kp, budget, p_tile=None):
    """Large-P path (v7x 64 MiB VMEM): P-tiled forward reduction + mix, then P-parallel
    inverse.  Resident VMEM is bounded by the P tile instead of the full Vandermonde."""
    cout, cin, _ = w_re.shape
    batch = x2d.shape[0] // cin
    grid_b = batch // bt
    w_bytes = (w_re.size + w_im.size) * 4

    def pick_p_tile(per_tp, fixed):
        tiles = sorted({pp // n for n in range(1, pp // 128 + 1)
                        if pp % n == 0 and (pp // n) % 128 == 0}, reverse=True)
        for tp in tiles:
            if fixed + per_tp * tp <= budget:
                return tp
        return tiles[-1] if tiles else pp

    # ---- phase 1: forward transform (P reduction) + channel mix ----
    fixed1 = 2 * w_bytes + 2 * bt * cout * 2 * kp * 2 + bt * cin * 2 * kp * 4
    per_tp1 = 2 * bt * cin * 2 + 2 * 2 * kp * 2
    tp1 = p_tile if p_tile is not None else pick_p_tile(per_tp1, fixed1)
    assert pp % tp1 == 0 and tp1 % 128 == 0
    vmem1 = min(budget, max(32 * 2**20, int(1.25 * (fixed1 + per_tp1 * tp1))))

    def run1(single):
        return pl.pallas_call(
            _fwd_mix_kernel,
            out_shape=jax.ShapeDtypeStruct((batch * cout, 2 * kp), jnp.bfloat16),
            grid=(grid_b, pp // tp1),
            in_specs=[
                pl.BlockSpec((bt * cin, tp1), lambda b, p: (b, p)),
                pl.BlockSpec((tp1, 2 * kp), lambda b, p: (p, 0)),
                _const_spec((cout, cin, kp), single),
                _const_spec((cout, cin, kp), single),
            ],
            out_specs=pl.BlockSpec((bt * cout, 2 * kp), lambda b, p: (b, 0)),
            scratch_shapes=[pltpu.VMEM((bt * cin, 2 * kp), jnp.float32)],
            compiler_params=pltpu.CompilerParams(
                dimension_semantics=("parallel", "arbitrary"),
                vmem_limit_bytes=vmem1,
            ),
        )(x2d, vf, w_re, w_im)

    try:
        m = run1(single=True)
    except Exception:
        m = run1(single=False)

    # ---- phase 2: inverse transform, P tiled in parallel on the output side ----
    fixed2 = 2 * bt * cout * 2 * kp * 2
    per_tp2 = 2 * 2 * kp * 2 + 2 * bt * cout * 4
    tp2 = p_tile if p_tile is not None else pick_p_tile(per_tp2, fixed2)
    assert pp % tp2 == 0 and tp2 % 128 == 0
    vmem2 = min(budget, max(32 * 2**20, int(1.25 * (fixed2 + per_tp2 * tp2))))

    return pl.pallas_call(
        _inverse_kernel,
        out_shape=jax.ShapeDtypeStruct((batch * cout, pp), jnp.float32),
        grid=(grid_b, pp // tp2),
        in_specs=[
            pl.BlockSpec((bt * cout, 2 * kp), lambda b, p: (b, 0)),
            pl.BlockSpec((2 * kp, tp2), lambda b, p: (0, p)),
        ],
        out_specs=pl.BlockSpec((bt * cout, tp2), lambda b, p: (b, p)),
        compiler_params=pltpu.CompilerParams(
            dimension_semantics=("parallel", "parallel"),
            vmem_limit_bytes=vmem2,
        ),
    )(m, vi)


def spectral_conv2d_fast(x, x_pos, y_pos, w1_re, w1_im, w2_re, w2_im, modes1, modes2,
                         *, transform=None, force_two_phase=False, p_tile=None):
    """Forward pass of SpectralConv2d_fast.  `transform` (from precompute_transform) can be
    passed in to hoist the Vandermonde construction out of the per-call path."""
    B, Cin, Nx, Ny = x.shape
    Cout = w1_re.shape[1]
    # In-place spectral slice assignment in the PyTorch module requires Cin == Cout.
    assert Cin == Cout
    P = Nx * Ny

    if transform is None:
        transform = precompute_transform(x_pos, y_pos, modes1, modes2)
    vf, vi, kp, pp = transform

    w_re, w_im = _pack_weights(w1_re, w1_im, w2_re, w2_im, kp)

    x2d = x.reshape(B * Cin, P).astype(jnp.bfloat16)
    if pp != P:
        x2d = jnp.pad(x2d, ((0, 0), (0, pp - P)))

    budget = _vmem_budget_bytes()

    # Fused-path per-step cost estimate (bytes).  NOTE: the f32 output tile dominates; emit
    # bf16 output here if downstream tolerates it (keeps f32 for the accuracy contract).
    const_fused = vf.size * 2 + vi.size * 2 + (w_re.size + w_im.size) * 4
    per_b_fused = 2 * Cin * pp * 2 + 2 * Cout * pp * 4 + Cout * 2 * kp * 2

    if not force_two_phase and const_fused + per_b_fused <= budget:
        bt = _pick_batch_tile(B, Cin, Cout, per_b_fused, budget - const_fused)
        out_flat = _run_fused(x2d, vf, vi, w_re, w_im, bt, pp, kp, budget)
    else:
        per_b_two = (2 * Cin * 128 * 2 + 2 * Cout * 2 * kp * 2
                     + Cin * 2 * kp * 4 + 2 * Cout * 128 * 4)
        avail_two = budget - 2 * (w_re.size + w_im.size) * 4 - 2 * 128 * 2 * kp * 2 * 2
        bt = _pick_batch_tile(B, Cin, Cout, per_b_two, avail_two, max_rows=512)
        out_flat = _run_two_phase(x2d, vf, vi, w_re, w_im, bt, pp, kp, budget,
                                  p_tile=p_tile)

    if pp != P:
        out_flat = out_flat[:, :P]
    return out_flat.reshape(B, Cout, Nx, Ny)


# ----------------------------------------------------------------------------
# Pure-JAX reference + test
# ----------------------------------------------------------------------------

def reference(x, x_pos, y_pos, w1, w2, m1, m2):
    """Complex reference mirroring the PyTorch forward semantics."""
    B, Cin, Nx, Ny = x.shape
    kx = jnp.concatenate([jnp.arange(m1), jnp.arange(-m1, 0)]).astype(jnp.float32)
    ky = jnp.arange(m2).astype(jnp.float32)
    Fx = jnp.exp(-1j * kx[:, None] * x_pos[None, :]) / math.sqrt(Nx)   # (2m1, Nx)
    Fy = jnp.exp(-1j * ky[:, None] * y_pos[None, :]) / math.sqrt(Ny)   # (m2, Ny)

    x_ft = jnp.einsum('kx,bixy,ly->bikl', Fx, x.astype(jnp.complex64), Fy)
    out_ft = x_ft
    out_ft = out_ft.at[:, :, :m1, :m2].set(
        jnp.einsum('bixy,ioxy->boxy', x_ft[:, :, :m1, :m2], w1))
    out_ft = out_ft.at[:, :, -m1:, :m2].set(
        jnp.einsum('bixy,ioxy->boxy', x_ft[:, :, -m1:, :m2], w2))
    out = jnp.einsum('bokl,kx,ly->boxy', out_ft, jnp.conj(Fx), jnp.conj(Fy))
    return jnp.real(out)


if __name__ == "__main__":
    # Small shapes consistent with the module (NCHW input, in_channels == out_channels).
    B, C, Nx, Ny = 2, 4, 16, 16
    m1 = m2 = 4
    scale = 1.0 / (C * C)

    key = jax.random.PRNGKey(0)
    k1, k2, k3, k4, k5, k6, k7 = jax.random.split(key, 7)

    x = jax.random.normal(k1, (B, C, Nx, Ny), dtype=jnp.float32)
    # Deterministic nonuniform point positions in [0, 2*pi) (the vft2d inputs).
    x_pos = jnp.sort(jax.random.uniform(k2, (Nx,), dtype=jnp.float32)) * 2.0 * math.pi
    y_pos = jnp.sort(jax.random.uniform(k3, (Ny,), dtype=jnp.float32)) * 2.0 * math.pi

    # weights = scale * torch.rand(..., dtype=cfloat): uniform [0,1) real & imag parts.
    w1_re = scale * jax.random.uniform(k4, (C, C, m1, m2), dtype=jnp.float32)
    w1_im = scale * jax.random.uniform(k5, (C, C, m1, m2), dtype=jnp.float32)
    w2_re = scale * jax.random.uniform(k6, (C, C, m1, m2), dtype=jnp.float32)
    w2_im = scale * jax.random.uniform(k7, (C, C, m1, m2), dtype=jnp.float32)

    # Vandermonde operands built ONCE (hoisted out of the per-call path).
    transform = precompute_transform(x_pos, y_pos, m1, m2)

    # Main (fused single-kernel) path.
    out = spectral_conv2d_fast(x, x_pos, y_pos, w1_re, w1_im, w2_re, w2_im, m1, m2,
                               transform=transform)
    out = jax.block_until_ready(out)

    # Also exercise the large-P two-phase path (forced, with a 128-wide P tile so the
    # reduction axis actually has multiple steps) at the same small shape.
    out_tp = spectral_conv2d_fast(x, x_pos, y_pos, w1_re, w1_im, w2_re, w2_im, m1, m2,
                                  transform=transform, force_two_phase=True, p_tile=128)
    out_tp = jax.block_until_ready(out_tp)

    ref = reference(x, x_pos, y_pos, w1_re + 1j * w1_im, w2_re + 1j * w2_im, m1, m2)
    ref = jax.block_until_ready(ref)

    # bf16 MXU operands with f32 accumulation: rtol 5e-2 precision contract.
    for name, got in (("fused", out), ("two_phase", out_tp)):
        if not bool(jnp.allclose(got, ref, rtol=5e-2, atol=5e-3)):
            raise AssertionError(
                f"{name} mismatch: max abs err = {float(jnp.max(jnp.abs(got - ref)))}")
    print("KERNEL_OK")
</pallas_src>

<mosaic_0001>
module attributes {stable_mosaic.version = 11 : i64} {
  func.func @_fused_kernel(%arg0: i32, %arg1: memref<8x256xbf16, #tpu.memory_space<vmem>>, %arg2: memref<256x256xbf16, #tpu.memory_space<vmem>>, %arg3: memref<4x4x128xf32, #tpu.memory_space<vmem>>, %arg4: memref<4x4x128xf32, #tpu.memory_space<vmem>>, %arg5: memref<256x256xbf16, #tpu.memory_space<vmem>>, %arg6: memref<8x256xf32, #tpu.memory_space<vmem>>, %arg7: memref<8x256xbf16, #tpu.memory_space<vmem>>) attributes {dimension_semantics = [#tpu.dimension_semantics<parallel>], iteration_bounds = array<i64: 1>, scalar_prefetch = 0 : i64, scratch_operands = 1 : i64, tpu.core_type = #tpu.core_type<tc>, window_params = [{transform_indices = @transform_0, window_bounds = array<i64: 8, 256>}, {pipeline_mode = #tpu.pipeline_mode<synchronous>, transform_indices = @transform_1, window_bounds = array<i64: 256, 256>}, {pipeline_mode = #tpu.pipeline_mode<synchronous>, transform_indices = @transform_2, window_bounds = array<i64: 4, 4, 128>}, {pipeline_mode = #tpu.pipeline_mode<synchronous>, transform_indices = @transform_3, window_bounds = array<i64: 4, 4, 128>}, {pipeline_mode = #tpu.pipeline_mode<synchronous>, transform_indices = @transform_4, window_bounds = array<i64: 256, 256>}, {transform_indices = @transform_5, window_bounds = array<i64: 8, 256>}]} {
    %c0 = arith.constant 0 : index
    %c0_0 = arith.constant 0 : index
    %0 = vector.load %arg1[%c0, %c0_0] : memref<8x256xbf16, #tpu.memory_space<vmem>>, vector<8x256xbf16>
    %c0_1 = arith.constant 0 : index
    %c0_2 = arith.constant 0 : index
    %1 = vector.load %arg2[%c0_1, %c0_2] : memref<256x256xbf16, #tpu.memory_space<vmem>>, vector<256x256xbf16>
    %cst = arith.constant dense<0.000000e+00> : vector<8x256xf32>
    %2 = tpu.matmul %0, %1, %cst {dimension_numbers = #tpu.dot_dimension_numbers<[1], [0], [0], [1], [0, 0, 1, 1], [], []>} : vector<8x256xbf16>, vector<256x256xbf16>, vector<8x256xf32> -> vector<8x256xf32>
    %c0_3 = arith.constant 0 : index
    %c0_4 = arith.constant 0 : index
    %c0_5 = arith.constant 0 : index
    %3 = vector.load %arg3[%c0_3, %c0_4, %c0_5] : memref<4x4x128xf32, #tpu.memory_space<vmem>>, vector<4x4x128xf32>
    %c0_6 = arith.constant 0 : index
    %c0_7 = arith.constant 0 : index
    %c0_8 = arith.constant 0 : index
    %4 = vector.load %arg4[%c0_6, %c0_7, %c0_8] : memref<4x4x128xf32, #tpu.memory_space<vmem>>, vector<4x4x128xf32>
    %5 = vector.extract_strided_slice %2 {offsets = [0, 0], sizes = [8, 128], strides = [1, 1]} : vector<8x256xf32> to vector<8x128xf32>
    %6 = vector.shape_cast %5 : vector<8x128xf32> to vector<2x4x128xf32>
    %7 = vector.extract_strided_slice %2 {offsets = [0, 128], sizes = [8, 128], strides = [1, 1]} : vector<8x256xf32> to vector<8x128xf32>
    %8 = vector.shape_cast %7 : vector<8x128xf32> to vector<2x4x128xf32>
    %cst_9 = arith.constant 0.000000e+00 : f32
    %9 = vector.broadcast %cst_9 : f32 to vector<2x4x128xf32>
    %cst_10 = arith.constant 0.000000e+00 : f32
    %10 = vector.broadcast %cst_10 : f32 to vector<2x4x128xf32>
    %11 = vector.extract_strided_slice %6 {offsets = [0, 0, 0], sizes = [2, 1, 128], strides = [1, 1, 1]} : vector<2x4x128xf32> to vector<2x1x128xf32>
    %12 = vector.shape_cast %11 : vector<2x1x128xf32> to vector<2x128xf32>
    %13 = vector.shape_cast %12 : vector<2x128xf32> to vector<2x1x128xf32>
    %14 = vector.extract_strided_slice %8 {offsets = [0, 0, 0], sizes = [2, 1, 128], strides = [1, 1, 1]} : vector<2x4x128xf32> to vector<2x1x128xf32>
    %15 = vector.shape_cast %14 : vector<2x1x128xf32> to vector<2x128xf32>
    %16 = vector.shape_cast %15 : vector<2x128xf32> to vector<2x1x128xf32>
    %17 = vector.extract_strided_slice %3 {offsets = [0, 0, 0], sizes = [4, 1, 128], strides = [1, 1, 1]} : vector<4x4x128xf32> to vector<4x1x128xf32>
    %18 = vector.shape_cast %17 : vector<4x1x128xf32> to vector<4x128xf32>
    %19 = vector.shape_cast %18 : vector<4x128xf32> to vector<1x4x128xf32>
    %20 = vector.extract_strided_slice %4 {offsets = [0, 0, 0], sizes = [4, 1, 128], strides = [1, 1, 1]} : vector<4x4x128xf32> to vector<4x1x128xf32>
    %21 = vector.shape_cast %20 : vector<4x1x128xf32> to vector<4x128xf32>
    %22 = vector.shape_cast %21 : vector<4x128xf32> to vector<1x4x128xf32>
    %23 = vector.broadcast %13 : vector<2x1x128xf32> to vector<2x4x128xf32>
    %24 = vector.broadcast %19 : vector<1x4x128xf32> to vector<2x4x128xf32>
    %25 = arith.mulf %23, %24 : vector<2x4x128xf32>
    %26 = arith.addf %9, %25 : vector<2x4x128xf32>
    %27 = vector.broadcast %16 : vector<2x1x128xf32> to vector<2x4x128xf32>
    %28 = vector.broadcast %22 : vector<1x4x128xf32> to vector<2x4x128xf32>
    %29 = arith.mulf %27, %28 : vector<2x4x128xf32>
    %30 = arith.subf %26, %29 : vector<2x4x128xf32>
    %31 = vector.broadcast %13 : vector<2x1x128xf32> to vector<2x4x128xf32>
    %32 = vector.broadcast %22 : vector<1x4x128xf32> to vector<2x4x128xf32>
    %33 = arith.mulf %31, %32 : vector<2x4x128xf32>
    %34 = arith.addf %10, %33 : vector<2x4x128xf32>
    %35 = vector.broadcast %16 : vector<2x1x128xf32> to vector<2x4x128xf32>
    %36 = vector.broadcast %19 : vector<1x4x128xf32> to vector<2x4x128xf32>
    %37 = arith.mulf %35, %36 : vector<2x4x128xf32>
    %38 = arith.addf %34, %37 : vector<2x4x128xf32>
    %39 = vector.extract_strided_slice %6 {offsets = [0, 1, 0], sizes = [2, 1, 128], strides = [1, 1, 1]} : vector<2x4x128xf32> to vector<2x1x128xf32>
    %40 = vector.shape_cast %39 : vector<2x1x128xf32> to vector<2x128xf32>
    %41 = vector.shape_cast %40 : vector<2x128xf32> to vector<2x1x128xf32>
    %42 = vector.extract_strided_slice %8 {offsets = [0, 1, 0], sizes = [2, 1, 128], strides = [1, 1, 1]} : vector<2x4x128xf32> to vector<2x1x128xf32>
    %43 = vector.shape_cast %42 : vector<2x1x128xf32> to vector<2x128xf32>
    %44 = vector.shape_cast %43 : vector<2x128xf32> to vector<2x1x128xf32>
    %45 = vector.extract_strided_slice %3 {offsets = [0, 1, 0], sizes = [4, 1, 128], strides = [1, 1, 1]} : vector<4x4x128xf32> to vector<4x1x128xf32>
    %46 = vector.shape_cast %45 : vector<4x1x128xf32> to vector<4x128xf32>
    %47 = vector.shape_cast %46 : vector<4x128xf32> to vector<1x4x128xf32>
    %48 = vector.extract_strided_slice %4 {offsets = [0, 1, 0], sizes = [4, 1, 128], strides = [1, 1, 1]} : vector<4x4x128xf32> to vector<4x1x128xf32>
    %49 = vector.shape_cast %48 : vector<4x1x128xf32> to vector<4x128xf32>
    %50 = vector.shape_cast %49 : vector<4x128xf32> to vector<1x4x128xf32>
    %51 = vector.broadcast %41 : vector<2x1x128xf32> to vector<2x4x128xf32>
    %52 = vector.broadcast %47 : vector<1x4x128xf32> to vector<2x4x128xf32>
    %53 = arith.mulf %51, %52 : vector<2x4x128xf32>
    %54 = arith.addf %30, %53 : vector<2x4x128xf32>
    %55 = vector.broadcast %44 : vector<2x1x128xf32> to vector<2x4x128xf32>
    %56 = vector.broadcast %50 : vector<1x4x128xf32> to vector<2x4x128xf32>
    %57 = arith.mulf %55, %56 : vector<2x4x128xf32>
    %58 = arith.subf %54, %57 : vector<2x4x128xf32>
    %59 = vector.broadcast %41 : vector<2x1x128xf32> to vector<2x4x128xf32>
    %60 = vector.broadcast %50 : vector<1x4x128xf32> to vector<2x4x128xf32>
    %61 = arith.mulf %59, %60 : vector<2x4x128xf32>
    %62 = arith.addf %38, %61 : vector<2x4x128xf32>
    %63 = vector.broadcast %44 : vector<2x1x128xf32> to vector<2x4x128xf32>
    %64 = vector.broadcast %47 : vector<1x4x128xf32> to vector<2x4x128xf32>
    %65 = arith.mulf %63, %64 : vector<2x4x128xf32>
    %66 = arith.addf %62, %65 : vector<2x4x128xf32>
    %67 = vector.extract_strided_slice %6 {offsets = [0, 2, 0], sizes = [2, 1, 128], strides = [1, 1, 1]} : vector<2x4x128xf32> to vector<2x1x128xf32>
    %68 = vector.shape_cast %67 : vector<2x1x128xf32> to vector<2x128xf32>
    %69 = vector.shape_cast %68 : vector<2x128xf32> to vector<2x1x128xf32>
    %70 = vector.extract_strided_slice %8 {offsets = [0, 2, 0], sizes = [2, 1, 128], strides = [1, 1, 1]} : vector<2x4x128xf32> to vector<2x1x128xf32>
    %71 = vector.shape_cast %70 : vector<2x1x128xf32> to vector<2x128xf32>
    %72 = vector.shape_cast %71 : vector<2x128xf32> to vector<2x1x128xf32>
    %73 = vector.extract_strided_slice %3 {offsets = [0, 2, 0], sizes = [4, 1, 128], strides = [1, 1, 1]} : vector<4x4x128xf32> to vector<4x1x128xf32>
    %74 = vector.shape_cast %73 : vector<4x1x128xf32> to vector<4x128xf32>
    %75 = vector.shape_cast %74 : vector<4x128xf32> to vector<1x4x128xf32>
    %76 = vector.extract_strided_slice %4 {offsets = [0, 2, 0], sizes = [4, 1, 128], strides = [1, 1, 1]} : vector<4x4x128xf32> to vector<4x1x128xf32>
    %77 = vector.shape_cast %76 : vector<4x1x128xf32> to vector<4x128xf32>
    %78 = vector.shape_cast %77 : vector<4x128xf32> to vector<1x4x128xf32>
    %79 = vector.broadcast %69 : vector<2x1x128xf32> to vector<2x4x128xf32>
    %80 = vector.broadcast %75 : vector<1x4x128xf32> to vector<2x4x128xf32>
    %81 = arith.mulf %79, %80 : vector<2x4x128xf32>
    %82 = arith.addf %58, %81 : vector<2x4x128xf32>
    %83 = vector.broadcast %72 : vector<2x1x128xf32> to vector<2x4x128xf32>
    %84 = vector.broadcast %78 : vector<1x4x128xf32> to vector<2x4x128xf32>
    %85 = arith.mulf %83, %84 : vector<2x4x128xf32>
    %86 = arith.subf %82, %85 : vector<2x4x128xf32>
    %87 = vector.broadcast %69 : vector<2x1x128xf32> to vector<2x4x128xf32>
    %88 = vector.broadcast %78 : vector<1x4x128xf32> to vector<2x4x128xf32>
    %89 = arith.mulf %87, %88 : vector<2x4x128xf32>
    %90 = arith.addf %66, %89 : vector<2x4x128xf32>
    %91 = vector.broadcast %72 : vector<2x1x128xf32> to vector<2x4x128xf32>
    %92 = vector.broadcast %75 : vector<1x4x128xf32> to vector<2x4x128xf32>
    %93 = arith.mulf %91, %92 : vector<2x4x128xf32>
    %94 = arith.addf %90, %93 : vector<2x4x128xf32>
    %95 = vector.extract_strided_slice %6 {offsets = [0, 3, 0], sizes = [2, 1, 128], strides = [1, 1, 1]} : vector<2x4x128xf32> to vector<2x1x128xf32>
    %96 = vector.shape_cast %95 : vector<2x1x128xf32> to vector<2x128xf32>
    %97 = vector.shape_cast %96 : vector<2x128xf32> to vector<2x1x128xf32>
    %98 = vector.extract_strided_slice %8 {offsets = [0, 3, 0], sizes = [2, 1, 128], strides = [1, 1, 1]} : vector<2x4x128xf32> to vector<2x1x128xf32>
    %99 = vector.shape_cast %98 : vector<2x1x128xf32> to vector<2x128xf32>
    %100 = vector.shape_cast %99 : vector<2x128xf32> to vector<2x1x128xf32>
    %101 = vector.extract_strided_slice %3 {offsets = [0, 3, 0], sizes = [4, 1, 128], strides = [1, 1, 1]} : vector<4x4x128xf32> to vector<4x1x128xf32>
    %102 = vector.shape_cast %101 : vector<4x1x128xf32> to vector<4x128xf32>
    %103 = vector.shape_cast %102 : vector<4x128xf32> to vector<1x4x128xf32>
    %104 = vector.extract_strided_slice %4 {offsets = [0, 3, 0], sizes = [4, 1, 128], strides = [1, 1, 1]} : vector<4x4x128xf32> to vector<4x1x128xf32>
    %105 = vector.shape_cast %104 : vector<4x1x128xf32> to vector<4x128xf32>
    %106 = vector.shape_cast %105 : vector<4x128xf32> to vector<1x4x128xf32>
    %107 = vector.broadcast %97 : vector<2x1x128xf32> to vector<2x4x128xf32>
    %108 = vector.broadcast %103 : vector<1x4x128xf32> to vector<2x4x128xf32>
    %109 = arith.mulf %107, %108 : vector<2x4x128xf32>
    %110 = arith.addf %86, %109 : vector<2x4x128xf32>
    %111 = vector.broadcast %100 : vector<2x1x128xf32> to vector<2x4x128xf32>
    %112 = vector.broadcast %106 : vector<1x4x128xf32> to vector<2x4x128xf32>
    %113 = arith.mulf %111, %112 : vector<2x4x128xf32>
    %114 = arith.subf %110, %113 : vector<2x4x128xf32>
    %115 = vector.broadcast %97 : vector<2x1x128xf32> to vector<2x4x128xf32>
    %116 = vector.broadcast %106 : vector<1x4x128xf32> to vector<2x4x128xf32>
    %117 = arith.mulf %115, %116 : vector<2x4x128xf32>
    %118 = arith.addf %94, %117 : vector<2x4x128xf32>
    %119 = vector.broadcast %100 : vector<2x1x128xf32> to vector<2x4x128xf32>
    %120 = vector.broadcast %103 : vector<1x4x128xf32> to vector<2x4x128xf32>
    %121 = arith.mulf %119, %120 : vector<2x4x128xf32>
    %122 = arith.addf %118, %121 : vector<2x4x128xf32>
    %123 = vector.shape_cast %114 : vector<2x4x128xf32> to vector<8x128xf32>
    %124 = vector.shape_cast %122 : vector<2x4x128xf32> to vector<8x128xf32>
    %125 = arith.truncf %123 : vector<8x128xf32> to vector<8x128xbf16>
    %c0_11 = arith.constant 0 : index
    %c0_12 = arith.constant 0 : index
    %126 = vector.load %arg7[%c0_11, %c0_12] : memref<8x256xbf16, #tpu.memory_space<vmem>>, vector<8x128xbf16>
    tpu.vector_store %arg7[%c0_11, %c0_12], %125 {strides = array<i32>} : memref<8x256xbf16, #tpu.memory_space<vmem>>, vector<8x128xbf16>,
    %127 = arith.truncf %124 : vector<8x128xf32> to vector<8x128xbf16>
    %c0_13 = arith.constant 0 : index
    %c128 = arith.constant 128 : index
    %128 = vector.load %arg7[%c0_13, %c128] : memref<8x256xbf16, #tpu.memory_space<vmem>>, vector<8x128xbf16>
    tpu.vector_store %arg7[%c0_13, %c128], %127 {strides = array<i32>} : memref<8x256xbf16, #tpu.memory_space<vmem>>, vector<8x128xbf16>,
    %c0_14 = arith.constant 0 : index
    %c0_15 = arith.constant 0 : index
    %129 = vector.load %arg7[%c0_14, %c0_15] : memref<8x256xbf16, #tpu.memory_space<vmem>>, vector<8x256xbf16>
    %c0_16 = arith.constant 0 : index
    %c0_17 = arith.constant 0 : index
    %130 = vector.load %arg5[%c0_16, %c0_17] : memref<256x256xbf16, #tpu.memory_space<vmem>>, vector<256x256xbf16>
    %cst_18 = arith.constant dense<0.000000e+00> : vector<8x256xf32>
    %131 = tpu.matmul %129, %130, %cst_18 {dimension_numbers = #tpu.dot_dimension_numbers<[1], [0], [0], [1], [0, 0, 1, 1], [], []>} : vector<8x256xbf16>, vector<256x256xbf16>, vector<8x256xf32> -> vector<8x256xf32>
    %c0_19 = arith.constant 0 : index
    %c0_20 = arith.constant 0 : index
    %132 = vector.load %arg6[%c0_19, %c0_20] : memref<8x256xf32, #tpu.memory_space<vmem>>, vector<8x256xf32>
    tpu.vector_store %arg6[%c0_19, %c0_20], %131 {strides = array<i32>} : memref<8x256xf32, #tpu.memory_space<vmem>>, vector<8x256xf32>,
    return
  }
  func.func @transform_0(%arg0: i32) -> (i32, i32) {
    %c0_i32 = arith.constant 0 : i32
    %c0_i32_0 = arith.constant 0 : i32
    return %arg0, %c0_i32 : i32, i32
  }
  func.func @transform_1(%arg0: i32) -> (i32, i32) {
    %c0_i32 = arith.constant 0 : i32
    %c0_i32_0 = arith.constant 0 : i32
    %c0_i32_1 = arith.constant 0 : i32
    return %c0_i32, %c0_i32_0 : i32, i32
  }
  func.func @transform_2(%arg0: i32) -> (i32, i32, i32) {
    %c0_i32 = arith.constant 0 : i32
    %c0_i32_0 = arith.constant 0 : i32
    %c0_i32_1 = arith.constant 0 : i32
    %c0_i32_2 = arith.constant 0 : i32
    return %c0_i32, %c0_i32_0, %c0_i32_1 : i32, i32, i32
  }
  func.func @transform_3(%arg0: i32) -> (i32, i32, i32) {
    %c0_i32 = arith.constant 0 : i32
    %c0_i32_0 = arith.constant 0 : i32
    %c0_i32_1 = arith.constant 0 : i32
    %c0_i32_2 = arith.constant 0 : i32
    return %c0_i32, %c0_i32_0, %c0_i32_1 : i32, i32, i32
  }
  func.func @transform_4(%arg0: i32) -> (i32, i32) {
    %c0_i32 = arith.constant 0 : i32
    %c0_i32_0 = arith.constant 0 : i32
    %c0_i32_1 = arith.constant 0 : i32
    return %c0_i32, %c0_i32_0 : i32, i32
  }
  func.func @transform_5(%arg0: i32) -> (i32, i32) {
    %c0_i32 = arith.constant 0 : i32
    %c0_i32_0 = arith.constant 0 : i32
    return %arg0, %c0_i32 : i32, i32
  }
}

module attributes {stable_mosaic.version = 11 : i64} {
  func.func @_fused_kernel(%arg0: i32, %arg1: memref<8x256xbf16, #tpu.memory_space<vmem>>, %arg2: memref<256x256xbf16, #tpu.memory_space<vmem>>, %arg3: memref<4x4x128xf32, #tpu.memory_space<vmem>>, %arg4: memref<4x4x128xf32, #tpu.memory_space<vmem>>, %arg5: memref<256x256xbf16, #tpu.memory_space<vmem>>, %arg6: memref<8x256xf32, #tpu.memory_space<vmem>>, %arg7: memref<8x256xbf16, #tpu.memory_space<vmem>>) attributes {dimension_semantics = [#tpu.dimension_semantics<parallel>], iteration_bounds = array<i64: 1>, scalar_prefetch = 0 : i64, scratch_operands = 1 : i64, tpu.core_type = #tpu.core_type<tc>, window_params = [{transform_indices = @transform_0, window_bounds = array<i64: 8, 256>}, {pipeline_mode = #tpu.pipeline_mode<synchronous>, transform_indices = @transform_1, window_bounds = array<i64: 256, 256>}, {pipeline_mode = #tpu.pipeline_mode<synchronous>, transform_indices = @transform_2, window_bounds = array<i64: 4, 4, 128>}, {pipeline_mode = #tpu.pipeline_mode<synchronous>, transform_indices = @transform_3, window_bounds = array<i64: 4, 4, 128>}, {pipeline_mode = #tpu.pipeline_mode<synchronous>, transform_indices = @transform_4, window_bounds = array<i64: 256, 256>}, {transform_indices = @transform_5, window_bounds = array<i64: 8, 256>}]} {
    %c0 = arith.constant 0 : index
    %c0_0 = arith.constant 0 : index
    %0 = vector.load %arg1[%c0, %c0_0] : memref<8x256xbf16, #tpu.memory_space<vmem>>, vector<8x256xbf16>
    %c0_1 = arith.constant 0 : index
    %c0_2 = arith.constant 0 : index
    %1 = vector.load %arg2[%c0_1, %c0_2] : memref<256x256xbf16, #tpu.memory_space<vmem>>, vector<256x256xbf16>
    %cst = arith.constant dense<0.000000e+00> : vector<8x256xf32>
    %2 = tpu.matmul %0, %1, %cst {dimension_numbers = #tpu.dot_dimension_numbers<[1], [0], [0], [1], [0, 0, 1, 1], [], []>} : vector<8x256xbf16>, vector<256x256xbf16>, vector<8x256xf32> -> vector<8x256xf32>
    %c0_3 = arith.constant 0 : index
    %c0_4 = arith.constant 0 : index
    %c0_5 = arith.constant 0 : index
    %3 = vector.load %arg3[%c0_3, %c0_4, %c0_5] : memref<4x4x128xf32, #tpu.memory_space<vmem>>, vector<4x4x128xf32>
    %c0_6 = arith.constant 0 : index
    %c0_7 = arith.constant 0 : index
    %c0_8 = arith.constant 0 : index
    %4 = vector.load %arg4[%c0_6, %c0_7, %c0_8] : memref<4x4x128xf32, #tpu.memory_space<vmem>>, vector<4x4x128xf32>
    %5 = vector.extract_strided_slice %2 {offsets = [0, 0], sizes = [8, 128], strides = [1, 1]} : vector<8x256xf32> to vector<8x128xf32>
    %6 = vector.shape_cast %5 : vector<8x128xf32> to vector<2x4x128xf32>
    %7 = vector.extract_strided_slice %2 {offsets = [0, 128], sizes = [8, 128], strides = [1, 1]} : vector<8x256xf32> to vector<8x128xf32>
    %8 = vector.shape_cast %7 : vector<8x128xf32> to vector<2x4x128xf32>
    %cst_9 = arith.constant 0.000000e+00 : f32
    %9 = vector.broadcast %cst_9 : f32 to vector<2x4x128xf32>
    %cst_10 = arith.constant 0.000000e+00 : f32
    %10 = vector.broadcast %cst_10 : f32 to vector<2x4x128xf32>
    %11 = vector.extract_strided_slice %6 {offsets = [0, 0, 0], sizes = [2, 1, 128], strides = [1, 1, 1]} : vector<2x4x128xf32> to vector<2x1x128xf32>
    %12 = vector.shape_cast %11 : vector<2x1x128xf32> to vector<2x128xf32>
    %13 = vector.shape_cast %12 : vector<2x128xf32> to vector<2x1x128xf32>
    %14 = vector.extract_strided_slice %8 {offsets = [0, 0, 0], sizes = [2, 1, 128], strides = [1, 1, 1]} : vector<2x4x128xf32> to vector<2x1x128xf32>
    %15 = vector.shape_cast %14 : vector<2x1x128xf32> to vector<2x128xf32>
    %16 = vector.shape_cast %15 : vector<2x128xf32> to vector<2x1x128xf32>
    %17 = vector.extract_strided_slice %3 {offsets = [0, 0, 0], sizes = [4, 1, 128], strides = [1, 1, 1]} : vector<4x4x128xf32> to vector<4x1x128xf32>
    %18 = vector.shape_cast %17 : vector<4x1x128xf32> to vector<4x128xf32>
    %19 = vector.shape_cast %18 : vector<4x128xf32> to vector<1x4x128xf32>
    %20 = vector.extract_strided_slice %4 {offsets = [0, 0, 0], sizes = [4, 1, 128], strides = [1, 1, 1]} : vector<4x4x128xf32> to vector<4x1x128xf32>
    %21 = vector.shape_cast %20 : vector<4x1x128xf32> to vector<4x128xf32>
    %22 = vector.shape_cast %21 : vector<4x128xf32> to vector<1x4x128xf32>
    %23 = vector.broadcast %13 : vector<2x1x128xf32> to vector<2x4x128xf32>
    %24 = vector.broadcast %19 : vector<1x4x128xf32> to vector<2x4x128xf32>
    %25 = arith.mulf %23, %24 : vector<2x4x128xf32>
    %26 = arith.addf %9, %25 : vector<2x4x128xf32>
    %27 = vector.broadcast %16 : vector<2x1x128xf32> to vector<2x4x128xf32>
    %28 = vector.broadcast %22 : vector<1x4x128xf32> to vector<2x4x128xf32>
    %29 = arith.mulf %27, %28 : vector<2x4x128xf32>
    %30 = arith.subf %26, %29 : vector<2x4x128xf32>
    %31 = vector.broadcast %13 : vector<2x1x128xf32> to vector<2x4x128xf32>
    %32 = vector.broadcast %22 : vector<1x4x128xf32> to vector<2x4x128xf32>
    %33 = arith.mulf %31, %32 : vector<2x4x128xf32>
    %34 = arith.addf %10, %33 : vector<2x4x128xf32>
    %35 = vector.broadcast %16 : vector<2x1x128xf32> to vector<2x4x128xf32>
    %36 = vector.broadcast %19 : vector<1x4x128xf32> to vector<2x4x128xf32>
    %37 = arith.mulf %35, %36 : vector<2x4x128xf32>
    %38 = arith.addf %34, %37 : vector<2x4x128xf32>
    %39 = vector.extract_strided_slice %6 {offsets = [0, 1, 0], sizes = [2, 1, 128], strides = [1, 1, 1]} : vector<2x4x128xf32> to vector<2x1x128xf32>
    %40 = vector.shape_cast %39 : vector<2x1x128xf32> to vector<2x128xf32>
    %41 = vector.shape_cast %40 : vector<2x128xf32> to vector<2x1x128xf32>
    %42 = vector.extract_strided_slice %8 {offsets = [0, 1, 0], sizes = [2, 1, 128], strides = [1, 1, 1]} : vector<2x4x128xf32> to vector<2x1x128xf32>
    %43 = vector.shape_cast %42 : vector<2x1x128xf32> to vector<2x128xf32>
    %44 = vector.shape_cast %43 : vector<2x128xf32> to vector<2x1x128xf32>
    %45 = vector.extract_strided_slice %3 {offsets = [0, 1, 0], sizes = [4, 1, 128], strides = [1, 1, 1]} : vector<4x4x128xf32> to vector<4x1x128xf32>
    %46 = vector.shape_cast %45 : vector<4x1x128xf32> to vector<4x128xf32>
    %47 = vector.shape_cast %46 : vector<4x128xf32> to vector<1x4x128xf32>
    %48 = vector.extract_strided_slice %4 {offsets = [0, 1, 0], sizes = [4, 1, 128], strides = [1, 1, 1]} : vector<4x4x128xf32> to vector<4x1x128xf32>
    %49 = vector.shape_cast %48 : vector<4x1x128xf32> to vector<4x128xf32>
    %50 = vector.shape_cast %49 : vector<4x128xf32> to vector<1x4x128xf32>
    %51 = vector.broadcast %41 : vector<2x1x128xf32> to vector<2x4x128xf32>
    %52 = vector.broadcast %47 : vector<1x4x128xf32> to vector<2x4x128xf32>
    %53 = arith.mulf %51, %52 : vector<2x4x128xf32>
    %54 = arith.addf %30, %53 : vector<2x4x128xf32>
    %55 = vector.broadcast %44 : vector<2x1x128xf32> to vector<2x4x128xf32>
    %56 = vector.broadcast %50 : vector<1x4x128xf32> to vector<2x4x128xf32>
    %57 = arith.mulf %55, %56 : vector<2x4x128xf32>
    %58 = arith.subf %54, %57 : vector<2x4x128xf32>
    %59 = vector.broadcast %41 : vector<2x1x128xf32> to vector<2x4x128xf32>
    %60 = vector.broadcast %50 : vector<1x4x128xf32> to vector<2x4x128xf32>
    %61 = arith.mulf %59, %60 : vector<2x4x128xf32>
    %62 = arith.addf %38, %61 : vector<2x4x128xf32>
    %63 = vector.broadcast %44 : vector<2x1x128xf32> to vector<2x4x128xf32>
    %64 = vector.broadcast %47 : vector<1x4x128xf32> to vector<2x4x128xf32>
    %65 = arith.mulf %63, %64 : vector<2x4x128xf32>
    %66 = arith.addf %62, %65 : vector<2x4x128xf32>
    %67 = vector.extract_strided_slice %6 {offsets = [0, 2, 0], sizes = [2, 1, 128], strides = [1, 1, 1]} : vector<2x4x128xf32> to vector<2x1x128xf32>
    %68 = vector.shape_cast %67 : vector<2x1x128xf32> to vector<2x128xf32>
    %69 = vector.shape_cast %68 : vector<2x128xf32> to vector<2x1x128xf32>
    %70 = vector.extract_strided_slice %8 {offsets = [0, 2, 0], sizes = [2, 1, 128], strides = [1, 1, 1]} : vector<2x4x128xf32> to vector<2x1x128xf32>
    %71 = vector.shape_cast %70 : vector<2x1x128xf32> to vector<2x128xf32>
    %72 = vector.shape_cast %71 : vector<2x128xf32> to vector<2x1x128xf32>
    %73 = vector.extract_strided_slice %3 {offsets = [0, 2, 0], sizes = [4, 1, 128], strides = [1, 1, 1]} : vector<4x4x128xf32> to vector<4x1x128xf32>
    %74 = vector.shape_cast %73 : vector<4x1x128xf32> to vector<4x128xf32>
    %75 = vector.shape_cast %74 : vector<4x128xf32> to vector<1x4x128xf32>
    %76 = vector.extract_strided_slice %4 {offsets = [0, 2, 0], sizes = [4, 1, 128], strides = [1, 1, 1]} : vector<4x4x128xf32> to vector<4x1x128xf32>
    %77 = vector.shape_cast %76 : vector<4x1x128xf32> to vector<4x128xf32>
    %78 = vector.shape_cast %77 : vector<4x128xf32> to vector<1x4x128xf32>
    %79 = vector.broadcast %69 : vector<2x1x128xf32> to vector<2x4x128xf32>
    %80 = vector.broadcast %75 : vector<1x4x128xf32> to vector<2x4x128xf32>
    %81 = arith.mulf %79, %80 : vector<2x4x128xf32>
    %82 = arith.addf %58, %81 : vector<2x4x128xf32>
    %83 = vector.broadcast %72 : vector<2x1x128xf32> to vector<2x4x128xf32>
    %84 = vector.broadcast %78 : vector<1x4x128xf32> to vector<2x4x128xf32>
    %85 = arith.mulf %83, %84 : vector<2x4x128xf32>
    %86 = arith.subf %82, %85 : vector<2x4x128xf32>
    %87 = vector.broadcast %69 : vector<2x1x128xf32> to vector<2x4x128xf32>
    %88 = vector.broadcast %78 : vector<1x4x128xf32> to vector<2x4x128xf32>
    %89 = arith.mulf %87, %88 : vector<2x4x128xf32>
    %90 = arith.addf %66, %89 : vector<2x4x128xf32>
    %91 = vector.broadcast %72 : vector<2x1x128xf32> to vector<2x4x128xf32>
    %92 = vector.broadcast %75 : vector<1x4x128xf32> to vector<2x4x128xf32>
    %93 = arith.mulf %91, %92 : vector<2x4x128xf32>
    %94 = arith.addf %90, %93 : vector<2x4x128xf32>
    %95 = vector.extract_strided_slice %6 {offsets = [0, 3, 0], sizes = [2, 1, 128], strides = [1, 1, 1]} : vector<2x4x128xf32> to vector<2x1x128xf32>
    %96 = vector.shape_cast %95 : vector<2x1x128xf32> to vector<2x128xf32>
    %97 = vector.shape_cast %96 : vector<2x128xf32> to vector<2x1x128xf32>
    %98 = vector.extract_strided_slice %8 {offsets = [0, 3, 0], sizes = [2, 1, 128], strides = [1, 1, 1]} : vector<2x4x128xf32> to vector<2x1x128xf32>
    %99 = vector.shape_cast %98 : vector<2x1x128xf32> to vector<2x128xf32>
    %100 = vector.shape_cast %99 : vector<2x128xf32> to vector<2x1x128xf32>
    %101 = vector.extract_strided_slice %3 {offsets = [0, 3, 0], sizes = [4, 1, 128], strides = [1, 1, 1]} : vector<4x4x128xf32> to vector<4x1x128xf32>
    %102 = vector.shape_cast %101 : vector<4x1x128xf32> to vector<4x128xf32>
    %103 = vector.shape_cast %102 : vector<4x128xf32> to vector<1x4x128xf32>
    %104 = vector.extract_strided_slice %4 {offsets = [0, 3, 0], sizes = [4, 1, 128], strides = [1, 1, 1]} : vector<4x4x128xf32> to vector<4x1x128xf32>
    %105 = vector.shape_cast %104 : vector<4x1x128xf32> to vector<4x128xf32>
    %106 = vector.shape_cast %105 : vector<4x128xf32> to vector<1x4x128xf32>
    %107 = vector.broadcast %97 : vector<2x1x128xf32> to vector<2x4x128xf32>
    %108 = vector.broadcast %103 : vector<1x4x128xf32> to vector<2x4x128xf32>
    %109 = arith.mulf %107, %108 : vector<2x4x128xf32>
    %110 = arith.addf %86, %109 : vector<2x4x128xf32>
    %111 = vector.broadcast %100 : vector<2x1x128xf32> to vector<2x4x128xf32>
    %112 = vector.broadcast %106 : vector<1x4x128xf32> to vector<2x4x128xf32>
    %113 = arith.mulf %111, %112 : vector<2x4x128xf32>
    %114 = arith.subf %110, %113 : vector<2x4x128xf32>
    %115 = vector.broadcast %97 : vector<2x1x128xf32> to vector<2x4x128xf32>
    %116 = vector.broadcast %106 : vector<1x4x128xf32> to vector<2x4x128xf32>
    %117 = arith.mulf %115, %116 : vector<2x4x128xf32>
    %118 = arith.addf %94, %117 : vector<2x4x128xf32>
    %119 = vector.broadcast %100 : vector<2x1x128xf32> to vector<2x4x128xf32>
    %120 = vector.broadcast %103 : vector<1x4x128xf32> to vector<2x4x128xf32>
    %121 = arith.mulf %119, %120 : vector<2x4x128xf32>
    %122 = arith.addf %118, %121 : vector<2x4x128xf32>
    %123 = vector.shape_cast %114 : vector<2x4x128xf32> to vector<8x128xf32>
    %124 = vector.shape_cast %122 : vector<2x4x128xf32> to vector<8x128xf32>
    %125 = arith.truncf %123 : vector<8x128xf32> to vector<8x128xbf16>
    %c0_11 = arith.constant 0 : index
    %c0_12 = arith.constant 0 : index
    %126 = vector.load %arg7[%c0_11, %c0_12] : memref<8x256xbf16, #tpu.memory_space<vmem>>, vector<8x128xbf16>
    tpu.vector_store %arg7[%c0_11, %c0_12], %125 {strides = array<i32>} : memref<8x256xbf16, #tpu.memory_space<vmem>>, vector<8x128xbf16>,
    %127 = arith.truncf %124 : vector<8x128xf32> to vector<8x128xbf16>
    %c0_13 = arith.constant 0 : index
    %c128 = arith.constant 128 : index
    %128 = vector.load %arg7[%c0_13, %c128] : memref<8x256xbf16, #tpu.memory_space<vmem>>, vector<8x128xbf16>
    tpu.vector_store %arg7[%c0_13, %c128], %127 {strides = array<i32>} : memref<8x256xbf16, #tpu.memory_space<vmem>>, vector<8x128xbf16>,
    %c0_14 = arith.constant 0 : index
    %c0_15 = arith.constant 0 : index
    %129 = vector.load %arg7[%c0_14, %c0_15] : memref<8x256xbf16, #tpu.memory_space<vmem>>, vector<8x256xbf16>
    %c0_16 = arith.constant 0 : index
    %c0_17 = arith.constant 0 : index
    %130 = vector.load %arg5[%c0_16, %c0_17] : memref<256x256xbf16, #tpu.memory_space<vmem>>, vector<256x256xbf16>
    %cst_18 = arith.constant dense<0.000000e+00> : vector<8x256xf32>
    %131 = tpu.matmul %129, %130, %cst_18 {dimension_numbers = #tpu.dot_dimension_numbers<[1], [0], [0], [1], [0, 0, 1, 1], [], []>} : vector<8x256xbf16>, vector<256x256xbf16>, vector<8x256xf32> -> vector<8x256xf32>
    %c0_19 = arith.constant 0 : index
    %c0_20 = arith.constant 0 : index
    %132 = vector.load %arg6[%c0_19, %c0_20] : memref<8x256xf32, #tpu.memory_space<vmem>>, vector<8x256xf32>
    tpu.vector_store %arg6[%c0_19, %c0_20], %131 {strides = array<i32>} : memref<8x256xf32, #tpu.memory_space<vmem>>, vector<8x256xf32>,
    return
  }
  func.func @transform_0(%arg0: i32) -> (i32, i32) {
    %c0_i32 = arith.constant 0 : i32
    %c0_i32_0 = arith.constant 0 : i32
    return %arg0, %c0_i32 : i32, i32
  }
  func.func @transform_1(%arg0: i32) -> (i32, i32) {
    %c0_i32 = arith.constant 0 : i32
    %c0_i32_0 = arith.constant 0 : i32
    %c0_i32_1 = arith.constant 0 : i32
    return %c0_i32, %c0_i32_0 : i32, i32
  }
  func.func @transform_2(%arg0: i32) -> (i32, i32, i32) {
    %c0_i32 = arith.constant 0 : i32
    %c0_i32_0 = arith.constant 0 : i32
    %c0_i32_1 = arith.constant 0 : i32
    %c0_i32_2 = arith.constant 0 : i32
    return %c0_i32, %c0_i32_0, %c0_i32_1 : i32, i32, i32
  }
  func.func @transform_3(%arg0: i32) -> (i32, i32, i32) {
    %c0_i32 = arith.constant 0 : i32
    %c0_i32_0 = arith.constant 0 : i32
    %c0_i32_1 = arith.constant 0 : i32
    %c0_i32_2 = arith.constant 0 : i32
    return %c0_i32, %c0_i32_0, %c0_i32_1 : i32, i32, i32
  }
  func.func @transform_4(%arg0: i32) -> (i32, i32) {
    %c0_i32 = arith.constant 0 : i32
    %c0_i32_0 = arith.constant 0 : i32
    %c0_i32_1 = arith.constant 0 : i32
    return %c0_i32, %c0_i32_0 : i32, i32
  }
  func.func @transform_5(%arg0: i32) -> (i32, i32) {
    %c0_i32 = arith.constant 0 : i32
    %c0_i32_0 = arith.constant 0 : i32
    return %arg0, %c0_i32 : i32, i32
  }
}

</mosaic_0001>

<bundles_post_ra>
// kernel: tpu_custom_call.1
= control target key start
LH: loop header
LB: loop body
LE: loop exit
PB: predicated region body
PF: predicated region fallthrough
CT: control target
= control target key end

     0   :  { %10 = vsyncpa [#allocation4], 0  ;;  %s1502_s0 = inlined_call_operand.hbm [shape: bf16[8,256], index: 0, kind: input, shape index: {}]   ;;  %s1503_s1 = inlined_call_operand.hbm [shape: bf16[256,256], index: 1, kind: input, shape index: {}]   ;;  %s1504_s2 = inlined_call_operand.hbm [shape: f32[4,4,128], index: 2, kind: input, shape index: {}]   ;;  %s1505_s3 = inlined_call_operand.hbm [shape: f32[4,4,128], index: 3, kind: input, shape index: {}]   ;;  %s1506_s4 = inlined_call_operand.hbm [shape: bf16[256,256], index: 4, kind: input, shape index: {}]   ;;  %s1507_s5 = inlined_call_operand.hbm [shape: f32[8,256], index: 5, kind: output, shape index: {}]  }
   0x1   :  { %11 = vsyncpa [#allocation7], 0 }
   0x2   :  { %12 = vsyncpa [#allocation10], 0  ;;  %s29_s20 = sshll.u32 %s1503_s1, 4  ;;  %s30_s20 = int_to_ptr.hbm [resolvable:$true] %s29_s20 }
   0x3   :  { %13 = vsyncpa [#allocation5], 0  ;;  %s1283_s21 = smov [#allocation6]   ;;  %s1284_s23 = smov 128  }
   0x4   :  { %s31_s22 = sshll.u32 %s1283_s21, 4  ;;  %s1285_s24 = smov 8   ;;  %s32_s22 = int_to_ptr.vmem [resolvable:$true] %s31_s22 }
   0x5   :  { %37 = dma.hbm_to_vmem [thread:$0]  %s30_s20, 4096, %s32_s22, [#allocation7], %s1284_s23, %s1284_s23, %s1285_s24  }
   0x6   :  { %s55_s27 = sshll.u32 %s1505_s3, 4  ;;  %s1286_s28 = smov [#allocation9]   ;;  %s56_s27 = int_to_ptr.hbm [resolvable:$true] %s55_s27 }
   0x7   :  { %s57_s29 = sshll.u32 %s1286_s28, 4  ;;  %s19_s6 = sshll.u32 %s1502_s0, 4  ;;  %s58_s29 = int_to_ptr.vmem [resolvable:$true] %s57_s29  ;;  %s20_s6 = int_to_ptr.hbm [resolvable:$true] %s19_s6 }
   0x8   :  { %s1287_s7 = smov 64   ;;  %s1288_s8 = smov 4  }
   0x9   :  { %63 = dma.hbm_to_vmem [thread:$0]  %s56_s27, 256, %s58_s29, [#allocation10], %s1287_s7, %s1287_s7, %s1288_s8  }
   0xa   :  { %s42_s11 = sshll.u32 %s1504_s2, 4  ;;  %s1289_s12 = smov [#allocation3]   ;;  %s43_s11 = int_to_ptr.hbm [resolvable:$true] %s42_s11 }
   0xb   :  { %s21_s13 = sshll.u32 %s1289_s12, 4  ;;  %s1290_s3 = smov [#allocation8]   ;;  %s22_s13 = int_to_ptr.vmem [resolvable:$true] %s21_s13 }
   0xc   :  { %24 = dma.hbm_to_vmem [thread:$0]  %s20_s6, 128, %s22_s13, [#allocation4]  }
   0xd   :  { %s44_s14 = sshll.u32 %s1290_s3, 4  ;;  %s68_s0 = sshll.u32 %s1506_s4, 4  ;;  %s45_s14 = int_to_ptr.vmem [resolvable:$true] %s44_s14  ;;  %s69_s0 = int_to_ptr.hbm [resolvable:$true] %s68_s0 }
   0xe   :  { %50 = dma.hbm_to_vmem [thread:$0]  %s43_s11, 256, %s45_s14, [#allocation7], %s1287_s7, %s1287_s7, %s1288_s8  }
   0xf   :  { %s1291_s17 = smov [#allocation11]  }
  0x10   :  { %s70_s18 = sshll.u32 %s1291_s17, 4  ;;  %s71_s18 = int_to_ptr.vmem [resolvable:$true] %s70_s18 }
  0x11   :  { %76 = dma.hbm_to_vmem [thread:$0]  %s69_s0, 4096, %s71_s18, [#allocation10], %s1284_s23, %s1284_s23, %s1285_s24  }
  0x12   :  { %1275 = dma.done.wait [#allocation4], 128  }
  0x13   :  { %1276 = vsyncadd [#allocation4], 4294967168 }
  0x14   :  { %1277 = dma.done.wait [#allocation7], 4352  }
  0x15   :  { %1278 = vsyncadd [#allocation7], 4294962944 }
  0x16   :  { %1279 = dma.done.wait [#allocation10], 4352  }
  0x17   :  { %1280 = vsyncadd [#allocation10], 4294962944  ;;  %v859_v0 = vld [vmem:[#allocation6 + $0x70] sm:$0xf]  ;;  %v1072_v1 = vld [vmem:[#allocation6 + $0x74] sm:$0xf0] }
  0x18   :  { %v923_v2 = vld [vmem:[#allocation6 + $0xf0] sm:$0xf]  ;;  %v860_v3 = vor.u32 %v1072_v1, %v859_v0  ;;  %v1088_v4 = vld [vmem:[#allocation6 + $0xf4] sm:$0xf0]  ;;  %v1071_v5 = vld [vmem:[#allocation6 + $0x74] sm:$0xf] }
  0x19   :  { %v861_v6 = vld [vmem:[#allocation6 + $0x78] sm:$0xf0]  ;;  %v924_v7 = vor.u32 %v1088_v4, %v923_v2  ;;  %v1087_v9 = vld [vmem:[#allocation6 + $0xf4] sm:$0xf]  ;;  %v851_v11 = vld [vmem:[#allocation6 + $0x60] sm:$0xf] }
  0x1a   :  { %v864_v8 = vor.u32 %v1071_v5, %v861_v6  ;;  %v925_v10 = vld [vmem:[#allocation6 + $0xf8] sm:$0xf0]  ;;  %297 = vmatpush.bf16.msra.mxu0 %v860_v3  ;;  %v1070_v13 = vld [vmem:[#allocation6 + $0x64] sm:$0xf0]  ;;  %v915_v14 = vld [vmem:[#allocation6 + $0xe0] sm:$0xf] }
  0x1b   :  { %v928_v12 = vor.u32 %v1087_v9, %v925_v10  ;;  %v1086_v15 = vld [vmem:[#allocation6 + $0xe4] sm:$0xf0]  ;;  %310 = vmatpush.bf16.msra.mxu1 %v924_v7  ;;  %v852_v16 = vor.u32 %v1070_v13, %v851_v11  ;;  %v1069_v18 = vld [vmem:[#allocation6 + $0x64] sm:$0xf]  ;;  %v853_v19 = vld [vmem:[#allocation6 + $0x68] sm:$0xf0] }
  0x1c   :  { %323 = vmatpush.bf16.msra.mxu2 %v864_v8  ;;  %v916_v17 = vor.u32 %v1086_v15, %v915_v14  ;;  %v1085_v20 = vld [vmem:[#allocation6 + $0xe4] sm:$0xf]  ;;  %v856_v21 = vor.u32 %v1069_v18, %v853_v19  ;;  %v917_v22 = vld [vmem:[#allocation6 + $0xe8] sm:$0xf0]  ;;  %v843_v23 = vld [vmem:[#allocation6 + $0x50] sm:$0xf] }
  0x1d   :  { %336 = vmatpush.bf16.msra.mxu3 %v928_v12  ;;  %v1068_v24 = vld [vmem:[#allocation6 + $0x54] sm:$0xf0]  ;;  %v920_v25 = vor.u32 %v1085_v20, %v917_v22  ;;  %v907_v26 = vld [vmem:[#allocation6 + $0xd0] sm:$0xf]  ;;  %v1067_v28 = vld [vmem:[#allocation6 + $0x54] sm:$0xf] }
  0x1e   :  { %v1084_v27 = vld [vmem:[#allocation6 + $0xd4] sm:$0xf0]  ;;  %298 = vmatpush.bf16.msra.mxu0 %v852_v16  ;;  %v844_v29 = vor.u32 %v1068_v24, %v843_v23  ;;  %v845_v30 = vld [vmem:[#allocation6 + $0x58] sm:$0xf0]  ;;  %v1083_v31 = vld [vmem:[#allocation6 + $0xd4] sm:$0xf] }
  0x1f   :  { %v909_v32 = vld [vmem:[#allocation6 + $0xd8] sm:$0xf0]  ;;  %311 = vmatpush.bf16.msra.mxu1 %v916_v17  ;;  %v908_v33 = vor.u32 %v1084_v27, %v907_v26  ;;  %v848_v34 = vor.u32 %v1067_v28, %v845_v30  ;;  %v835_v35 = vld [vmem:[#allocation6 + $0x40] sm:$0xf]  ;;  %v1066_v36 = vld [vmem:[#allocation6 + $0x44] sm:$0xf0] }
  0x20   :  { %324 = vmatpush.bf16.msra.mxu2 %v856_v21  ;;  %v899_v37 = vld [vmem:[#allocation6 + $0xc0] sm:$0xf]  ;;  %v912_v38 = vor.u32 %v1083_v31, %v909_v32  ;;  %v1082_v39 = vld [vmem:[#allocation6 + $0xc4] sm:$0xf0]  ;;  %v1065_v40 = vld [vmem:[#allocation6 + $0x44] sm:$0xf]  ;;  %v836_v44 = vor.u32 %v1066_v36, %v835_v35 }
  0x21   :  { %337 = vmatpush.bf16.msra.mxu3 %v920_v25  ;;  %v837_v41 = vld [vmem:[#allocation6 + $0x48] sm:$0xf0]  ;;  %v1081_v42 = vld [vmem:[#allocation6 + $0xc4] sm:$0xf]  ;;  %v900_v45 = vor.u32 %v1082_v39, %v899_v37  ;;  %v827_v47 = vld [vmem:[#allocation6 + $0x30] sm:$0xf] }
  0x22   :  { %v901_v43 = vld [vmem:[#allocation6 + $0xc8] sm:$0xf0]  ;;  %299 = vmatpush.bf16.msra.mxu0 %v844_v29  ;;  %v840_v46 = vor.u32 %v1065_v40, %v837_v41  ;;  %v1064_v48 = vld [vmem:[#allocation6 + $0x34] sm:$0xf0]  ;;  %v891_v49 = vld [vmem:[#allocation6 + $0xb0] sm:$0xf] }
  0x23   :  { %312 = vmatpush.bf16.msra.mxu1 %v908_v33  ;;  %v904_v50 = vor.u32 %v1081_v42, %v901_v43  ;;  %v1080_v51 = vld [vmem:[#allocation6 + $0xb4] sm:$0xf0]  ;;  %v1063_v52 = vld [vmem:[#allocation6 + $0x34] sm:$0xf]  ;;  %v829_v53 = vld [vmem:[#allocation6 + $0x38] sm:$0xf0]  ;;  %v828_v56 = vor.u32 %v1064_v48, %v827_v47 }
  0x24   :  { %325 = vmatpush.bf16.msra.mxu2 %v848_v34  ;;  %v1079_v54 = vld [vmem:[#allocation6 + $0xb4] sm:$0xf]  ;;  %v893_v55 = vld [vmem:[#allocation6 + $0xb8] sm:$0xf0]  ;;  %v892_v57 = vor.u32 %v1080_v51, %v891_v49  ;;  %v832_v58 = vor.u32 %v1063_v52, %v829_v53  ;;  %v819_v59 = vld [vmem:[#allocation6 + $0x20] sm:$0xf] }
  0x25   :  { %338 = vmatpush.bf16.msra.mxu3 %v912_v38  ;;  %v1062_v60 = vld [vmem:[#allocation6 + $0x24] sm:$0xf0]  ;;  %v883_v61 = vld [vmem:[#allocation6 + $0xa0] sm:$0xf]  ;;  %v896_v62 = vor.u32 %v1079_v54, %v893_v55  ;;  %v1061_v0 = vld [vmem:[#allocation6 + $0x24] sm:$0xf] }
  0x26   :  { %300 = vmatpush.bf16.msra.mxu0 %v836_v44  ;;  %v1078_v63 = vld [vmem:[#allocation6 + $0xa4] sm:$0xf0]  ;;  %v821_v1 = vld [vmem:[#allocation6 + $0x28] sm:$0xf0]  ;;  %v1077_v2 = vld [vmem:[#allocation6 + $0xa4] sm:$0xf]  ;;  %v820_v4 = vor.u32 %v1062_v60, %v819_v59 }
  0x27   :  { %313 = vmatpush.bf16.msra.mxu1 %v900_v45  ;;  %v885_v3 = vld [vmem:[#allocation6 + $0xa8] sm:$0xf0]  ;;  %v884_v5 = vor.u32 %v1078_v63, %v883_v61  ;;  %v824_v6 = vor.u32 %v1061_v0, %v821_v1  ;;  %v811_v7 = vld [vmem:[#allocation6 + $0x10] sm:$0xf]  ;;  %v1060_v8 = vld [vmem:[#allocation6 + $0x14] sm:$0xf0] }
  0x28   :  { %326 = vmatpush.bf16.msra.mxu2 %v840_v46  ;;  %v875_v9 = vld [vmem:[#allocation6 + $0x90] sm:$0xf]  ;;  %v888_v10 = vor.u32 %v1077_v2, %v885_v3  ;;  %v1076_v11 = vld [vmem:[#allocation6 + $0x94] sm:$0xf0]  ;;  %v1059_v12 = vld [vmem:[#allocation6 + $0x14] sm:$0xf]  ;;  %v812_v16 = vor.u32 %v1060_v8, %v811_v7 }
  0x29   :  { %339 = vmatpush.bf16.msra.mxu3 %v904_v50  ;;  %v813_v13 = vld [vmem:[#allocation6 + $0x18] sm:$0xf0]  ;;  %v1075_v14 = vld [vmem:[#allocation6 + $0x94] sm:$0xf]  ;;  %v876_v18 = vor.u32 %v1076_v11, %v875_v9  ;;  %v803_v20 = vld [vmem:[#allocation6] sm:$0xf] }
  0x2a   :  { %301 = vmatpush.bf16.msra.mxu0 %v828_v56  ;;  %v877_v15 = vld [vmem:[#allocation6 + $0x98] sm:$0xf0]  ;;  %v816_v19 = vor.u32 %v1059_v12, %v813_v13  ;;  %v1058_v21 = vld [vmem:[#allocation6 + $0x4] sm:$0xf0]  ;;  %v867_v22 = vld [vmem:[#allocation6 + $0x80] sm:$0xf] }
  0x2b   :  { %314 = vmatpush.bf16.msra.mxu1 %v892_v57  ;;  %v97_v17 = vld [vmem:[#allocation3] sm:$0xff]  ;;  %v880_v23 = vor.u32 %v1075_v14, %v877_v15  ;;  %v1074_v24 = vld [vmem:[#allocation6 + $0x84] sm:$0xf0]  ;;  %v1057_v25 = vld [vmem:[#allocation6 + $0x4] sm:$0xf]  ;;  %v804_v30 = vor.u32 %v1058_v21, %v803_v20  ;;  %vm370_vm0 = vcmask 1041409  }
  0x2c   :  { %327 = vmatpush.bf16.msra.mxu2 %v832_v58  ;;  %v805_v26 = vld [vmem:[#allocation6 + $0x8] sm:$0xf0]  ;;  %v1073_v27 = vld [vmem:[#allocation6 + $0x84] sm:$0xf]  ;;  %v131_v29 = vunpack.c.l.b16 %v97_v17  ;;  %v132_v31 = vunpack.c.h.b16 %v97_v17  ;;  %v868_v32 = vor.u32 %v1074_v24, %v867_v22  ;;  %v354_v38 = vld [vmem:[#allocation9 + $0x4] sm:$0xf] }
  0x2d   :  { %340 = vmatpush.bf16.msra.mxu3 %v896_v62  ;;  %v869_v28 = vld [vmem:[#allocation6 + $0x88] sm:$0xf0]  ;;  %v808_v33 = vor.u32 %v1057_v25, %v805_v26  ;;  %v350_v37 = vld [vmem:[#allocation8 + $0x4] sm:$0xf]  ;;  %v1344_v39 = vld [vmem:[#allocation8 + $0x8] sm:$0xf] }
  0x2e   :  { %302 = vmatpush.bf16.msra.mxu0 %v820_v4  ;;  %v872_v34 = vor.u32 %v1073_v27, %v869_v28  ;;  %v133_v35 = vpack.c.b16 %v131_v29, %v131_v29  ;;  %v134_v36 = vpack.c.b16 %v132_v31, %v132_v31  ;;  %v369_v40 = vrot.slane %v350_v37, 7  ;;  %v349_v41 = vld [vmem:[#allocation8] sm:$0xf]  ;;  %v1346_v42 = vld [vmem:[#allocation9 + $0x8] sm:$0xf]  ;;  %s1292_s2 = smov [#allocation12]  }
  0x2f   :  { %315 = vmatpush.bf16.msra.mxu1 %v884_v5  ;;  %v389_v43 = vrot.slane %v354_v38, 7  ;;  %v1348_v44 = vld [vmem:[#allocation8 + $0xc] sm:$0xf]  ;;  %v353_v45 = vld [vmem:[#allocation9] sm:$0xf]  ;;  %v372_v46 = vrot.slane %v1344_v39, 6 }
  0x30   :  { %328 = vmatpush.bf16.msra.mxu2 %v824_v6  ;;  %v1351_v47 = vld [vmem:[#allocation9 + $0xc] sm:$0xf]  ;;  %v371_v48 = vsel %vm370_vm0, %v369_v40, %v349_v41  ;;  %vm373_vm1 = vcmask 1042434   ;;  %v391_v49 = vrot.slane %v1346_v42, 6  ;;  %v410_v50 = vrot.slane %v349_v41, 1  ;;  %s787_s4 = sshll.u32 %s1292_s2, 4  ;;  %s788_s4 = int_to_ptr.vmem [resolvable:$true] %s787_s4 }
  0x31   :  { %341 = vmatpush.bf16.msra.mxu3 %v888_v10  ;;  %v390_v51 = vsel %vm370_vm0, %v389_v43, %v353_v45  ;;  %v375_v52 = vrot.slane %v1348_v44, 5  ;;  %v374_v53 = vsel %vm373_vm1, %v372_v46, %v371_v48  ;;  %vm376_vm2 = vcmask 1043459   ;;  %v987_v14 = vld [vmem:[#allocation11 + $0x70] sm:$0xf]  ;;  %v1104_v15 = vld [vmem:[#allocation11 + $0x74] sm:$0xf0] }
  0x32   :  { %303 = vmatpush.bf16.msra.mxu0 %v812_v16  ;;  %v393_v54 = vrot.slane %v1351_v47, 5  ;;  %v412_v55 = vrot.slane %v1344_v39, 7  ;;  %v392_v56 = vsel %vm373_vm1, %v391_v49, %v390_v51  ;;  %v411_v57 = vsel %vm370_vm0, %v350_v37, %v410_v50  ;;  %v1051_v16 = vld [vmem:[#allocation11 + $0xf0] sm:$0xf]  ;;  %v1120_v21 = vld [vmem:[#allocation11 + $0xf4] sm:$0xf0] }
  0x33   :  { %316 = vmatpush.bf16.msra.mxu1 %v876_v18  ;;  %v414_v58 = vrot.slane %v1348_v44, 6  ;;  %v423_v59 = vrot.slane %v353_v45, 1  ;;  %v444_v60 = vrot.slane %v349_v41, 2  ;;  %v445_v61 = vrot.slane %v350_v37, 1  ;;  %v1103_v22 = vld [vmem:[#allocation11 + $0x74] sm:$0xf] }
  0x34   :  { %329 = vmatpush.bf16.msra.mxu2 %v816_v19  ;;  %v457_v62 = vrot.slane %v353_v45, 2  ;;  %v458_v63 = vrot.slane %v354_v38, 1  ;;  %v478_v0 = vrot.slane %v349_v41, 3  ;;  %v479_v1 = vrot.slane %v350_v37, 2  ;;  %v1119_v28 = vld [vmem:[#allocation11 + $0xf4] sm:$0xf] }
  0x35   :  { %342 = vmatpush.bf16.msra.mxu3 %v880_v23  ;;  %v491_v2 = vrot.slane %v353_v45, 3  ;;  %v492_v3 = vrot.slane %v354_v38, 2  ;;  %v425_v5 = vrot.slane %v1346_v42, 7  ;;  %v427_v6 = vrot.slane %v1351_v47, 6  ;;  %v989_v23 = vld [vmem:[#allocation11 + $0x78] sm:$0xf0] }
  0x36   :  { %304 = vmatpush.bf16.msra.mxu0 %v804_v30  ;;  %v481_v7 = vrot.slane %v1344_v39, 1  ;;  %v494_v8 = vrot.slane %v1346_v42, 1  ;;  %v1368_v10 = vsel %vm376_vm2, %v375_v52, %v374_v53  ;;  %v1371_v11 = vsel %vm376_vm2, %v393_v54, %v392_v56  ;;  %v1053_v29 = vld [vmem:[#allocation11 + $0xf8] sm:$0xf0]  ;;  %v979_v45 = vld [vmem:[#allocation11 + $0x60] sm:$0xf] }
  0x37   :  { %317 = vmatpush.bf16.msra.mxu1 %v868_v32  ;;  %v413_v12 = vsel %vm373_vm1, %v412_v55, %v411_v57  ;;  %v424_v13 = vsel %vm370_vm0, %v354_v38, %v423_v59  ;;  %v446_v18 = vsel %vm370_vm0, %v445_v61, %v444_v60  ;;  %v459_v19 = vsel %vm370_vm0, %v458_v63, %v457_v62  ;;  %v1102_v46 = vld [vmem:[#allocation11 + $0x64] sm:$0xf0]  ;;  %v1043_v51 = vld [vmem:[#allocation11 + $0xe0] sm:$0xf]  ;;  %v1101_v59 = vld [vmem:[#allocation11 + $0x64] sm:$0xf] }
  0x38   :  { %330 = vmatpush.bf16.msra.mxu2 %v808_v33  ;;  %v988_v20 = vor.u32 %v1104_v15, %v987_v14  ;;  %v480_v24 = vsel %vm370_vm0, %v479_v1, %v478_v0  ;;  %v493_v25 = vsel %vm370_vm0, %v492_v3, %v491_v2  ;;  %v1052_v26 = vor.u32 %v1120_v21, %v1051_v16  ;;  %v1118_v52 = vld [vmem:[#allocation11 + $0xe4] sm:$0xf0]  ;;  %v981_v60 = vld [vmem:[#allocation11 + $0x68] sm:$0xf0]  ;;  %v1117_v2 = vld [vmem:[#allocation11 + $0xe4] sm:$0xf] }
  0x39   :  { %343 = vmatpush.bf16.msra.mxu3 %v872_v34  ;;  %305 = vmatmul.bf16.vlgmr.msra.gmra.mxu0 %v133_v35  ;;  %v992_v27 = vor.u32 %v1103_v22, %v989_v23  ;;  %v426_v31 = vsel %vm373_vm1, %v425_v5, %v424_v13  ;;  %v448_v32 = vrot.slane %v1348_v44, 7  ;;  %v461_v33 = vrot.slane %v1351_v47, 7  ;;  %v1045_v3 = vld [vmem:[#allocation11 + $0xe8] sm:$0xf0]  ;;  %v1116_v13 = vld [vmem:[#allocation11 + $0xd4] sm:$0xf0] }
  0x3a   :  { %318 = vmatmul.bf16.vlgmr.msra.gmra.mxu1 %v134_v36  ;;  %728 = vmatpush.bf16.msrb.mxu0 %v988_v20  ;;  %v1056_v37 = vor.u32 %v1119_v28, %v1053_v29  ;;  %v482_v41 = vsel %vm373_vm1, %v481_v7, %v480_v24  ;;  %v495_v43 = vsel %vm373_vm1, %v494_v8, %v493_v25  ;;  %s789_s21 = sshll.u32 %s1507_s5, 4  ;;  %s790_s21 = int_to_ptr.hbm [resolvable:$true] %s789_s21 }
  0x3b   :  { %331 = vmatmul.bf16.vlgmr.msra.gmra.mxu2 %v133_v35  ;;  %v447_v35 = vsel %vm373_vm1, %v1344_v39, %v446_v18  ;;  %741 = vmatpush.bf16.msrb.mxu1 %v1052_v26  ;;  %v1398_v39 = vsel %vm376_vm2, %v414_v58, %v413_v12  ;;  %v1416_v63 = vsel %vm376_vm2, %v1348_v44, %v482_v41  ;;  %v1035_v12 = vld [vmem:[#allocation11 + $0xd0] sm:$0xf] }
  0x3c   :  { %344 = vmatmul.bf16.vlgmr.msra.gmra.mxu3 %v134_v36  ;;  %v460_v36 = vsel %vm373_vm1, %v1346_v42, %v459_v19  ;;  %754 = vmatpush.bf16.msrb.mxu2 %v992_v27  ;;  %v1401_v42 = vsel %vm376_vm2, %v427_v6, %v426_v31  ;;  %v1407_v55 = vsel %vm376_vm2, %v448_v32, %v447_v35 }
  0x3d   :  { %767 = vmatpush.bf16.msrb.mxu3 %v1056_v37  ;;  %v1410_v56 = vsel %vm376_vm2, %v461_v33, %v460_v36  ;;  %v1420_v0 = vsel %vm376_vm2, %v1351_v47, %v495_v43  ;;  %v980_v8 = vor.u32 %v1102_v46, %v979_v45  ;;  %v1044_v47 = vor.u32 %v1118_v52, %v1043_v51 }
  0x3e   :  { %v984_v15 = vor.u32 %v1101_v59, %v981_v60  ;;  %v1048_v22 = vor.u32 %v1117_v2, %v1045_v3  ;;  %v1036_v24 = vor.u32 %v1116_v13, %v1035_v12 }
  0x3f   :  { %729 = vmatpush.bf16.msrb.mxu0 %v980_v8  ;;  %742 = vmatpush.bf16.msrb.mxu1 %v1044_v47  ;;  %v1113_v47 = vld [vmem:[#allocation11 + $0xc4] sm:$0xf] }
  0x40   :  { %755 = vmatpush.bf16.msrb.mxu2 %v984_v15  ;;  %v1029_v15 = vld [vmem:[#allocation11 + $0xc8] sm:$0xf0] }
  0x41   :  { %768 = vmatpush.bf16.msrb.mxu3 %v1048_v22  ;;  %v1096_v22 = vld [vmem:[#allocation11 + $0x34] sm:$0xf0] }
  0x43   :  { %743 = vmatpush.bf16.msrb.mxu1 %v1036_v24  ;;  %v1112_v24 = vld [vmem:[#allocation11 + $0xb4] sm:$0xf0] }
  0xb6   :  { %v306_v4 = vpop.f32.mrf.mxu0 }
  0xb7   :  { %v319_v9 = vpop.f32.mrf.mxu1 }
  0xb8   :  { %v1375_v17 = vadd.f32 %v319_v9, %v306_v4  ;;  %v971_v4 = vld [vmem:[#allocation11 + $0x50] sm:$0xf]  ;;  %v1100_v9 = vld [vmem:[#allocation11 + $0x54] sm:$0xf0] }
  0xb9   :  { %v972_v23 = vor.u32 %v1100_v9, %v971_v4  ;;  %v965_v9 = vld [vmem:[#allocation11 + $0x48] sm:$0xf0] }
  0xba   :  { %v1382_v30 = vrot.slane %v1375_v17, 4  ;;  %v363_v34 = vperm.slane %v1375_v17, 0  ;;  %v408_v38 = vperm.slane %v1375_v17, 1  ;;  %v442_v40 = vperm.slane %v1375_v17, 2 }
  0xbb   :  { %v476_v49 = vperm.slane %v1375_v17, 3  ;;  %730 = vmatpush.bf16.msrb.mxu0 %v972_v23  ;;  %v1019_v23 = vld [vmem:[#allocation11 + $0xb0] sm:$0xf] }
  0xbc   :  { %v364_v48 = vperm.slane %v1382_v30, 0  ;;  %v409_v53 = vperm.slane %v1382_v30, 1  ;;  %v443_v54 = vperm.slane %v1382_v30, 2  ;;  %v379_v61 = vmul.f32 %v1368_v10, %v363_v34 }
  0xbd   :  { %v400_v62 = vmul.f32 %v1371_v11, %v363_v34  ;;  %v417_v5 = vmul.f32 %v1398_v39, %v408_v38  ;;  %v434_v6 = vmul.f32 %v1401_v42, %v408_v38  ;;  %v1428_v14 = vmul.f32 %v1407_v55, %v442_v40 }
  0xbe   :  { %v332_v50 = vpop.f32.mrf.mxu2  ;;  %v308_v58 = vpop.f32.mrf.mxu0  ;;  %v380_v44 = vmul.f32 %v1368_v10, %v364_v48  ;;  %v401_v16 = vmul.f32 %v1371_v11, %v364_v48  ;;  %v418_v18 = vmul.f32 %v1398_v39, %v409_v53  ;;  %v435_v25 = vmul.f32 %v1401_v42, %v409_v53  ;;  %v1099_v48 = vld [vmem:[#allocation11 + $0x54] sm:$0xf] }
  0xbf   :  { %v345_v57 = vpop.f32.mrf.mxu3  ;;  %v321_v1 = vpop.f32.mrf.mxu1  ;;  %v452_v29 = vmul.f32 %v1407_v55, %v443_v54  ;;  %v1443_v31 = vmul.f32 %v1410_v56, %v442_v40  ;;  %v1446_v32 = vmul.f32 %v1410_v56, %v443_v54  ;;  %v477_v43 = vperm.slane %v1382_v30, 3  ;;  %v1115_v53 = vld [vmem:[#allocation11 + $0xd4] sm:$0xf]  ;;  %v1037_v54 = vld [vmem:[#allocation11 + $0xd8] sm:$0xf0] }
  0xc0   :  { %v1424_v7 = vadd.f32 %v345_v57, %v332_v50  ;;  %v485_v40 = vmul.f32 %v1416_v63, %v476_v49  ;;  %v973_v50 = vld [vmem:[#allocation11 + $0x58] sm:$0xf0]  ;;  %v963_v57 = vld [vmem:[#allocation11 + $0x40] sm:$0xf] }
  0xc1   :  { %v1027_v1 = vld [vmem:[#allocation11 + $0xc0] sm:$0xf]  ;;  %v976_v13 = vor.u32 %v1099_v48, %v973_v50  ;;  %v1020_v48 = vor.u32 %v1112_v24, %v1019_v23 }
  0xc2   :  { %v1433_v19 = vrot.slane %v1424_v7, 4  ;;  %v383_v20 = vperm.slane %v1424_v7, 0  ;;  %v421_v21 = vperm.slane %v1424_v7, 1  ;;  %v455_v46 = vperm.slane %v1424_v7, 2  ;;  %v947_v50 = vld [vmem:[#allocation11 + $0x20] sm:$0xf] }
  0xc3   :  { %756 = vmatpush.bf16.msrb.mxu2 %v976_v13  ;;  %v1108_v13 = vld [vmem:[#allocation11 + $0x94] sm:$0xf0]  ;;  %v931_v23 = vld [vmem:[#allocation11] sm:$0xf] }
  0xc4   :  { %v384_v26 = vperm.slane %v1433_v19, 0  ;;  %v396_v27 = vmul.f32 %v1371_v11, %v383_v20  ;;  %v404_v28 = vmul.f32 %v383_v20, %v1368_v10  ;;  %v422_v33 = vperm.slane %v1433_v19, 1 }
  0xc5   :  { %v430_v45 = vmul.f32 %v1401_v42, %v421_v21  ;;  %v438_v59 = vmul.f32 %v421_v21, %v1398_v39  ;;  %v456_v60 = vperm.slane %v1433_v19, 2  ;;  %v464_v12 = vmul.f32 %v1410_v56, %v455_v46 }
  0xc6   :  { %v334_v34 = vpop.f32.mrf.mxu2  ;;  %v397_v35 = vmul.f32 %v1371_v11, %v384_v26  ;;  %v398_v36 = vsub.f32 %v379_v61, %v396_v27  ;;  %v405_v37 = vmul.f32 %v384_v26, %v1368_v10  ;;  %v406_v38 = vadd.f32 %v404_v28, %v400_v62  ;;  %v1098_v62 = vld [vmem:[#allocation11 + $0x44] sm:$0xf0]  ;;  %v1095_v28 = vld [vmem:[#allocation11 + $0x34] sm:$0xf] }
  0xc7   :  { %v347_v41 = vpop.f32.mrf.mxu3  ;;  %v431_v58 = vmul.f32 %v1401_v42, %v422_v33  ;;  %v489_v61 = vperm.slane %v1424_v7, 3  ;;  %v439_v8 = vmul.f32 %v422_v33, %v1398_v39  ;;  %v486_v42 = vmul.f32 %v1416_v63, %v477_v43  ;;  %v957_v33 = vld [vmem:[#allocation11 + $0x38] sm:$0xf0] }
  0xc8   :  { %v399_v11 = vsub.f32 %v380_v44, %v397_v35  ;;  %v407_v51 = vadd.f32 %v405_v37, %v401_v16  ;;  %v419_v52 = vadd.f32 %v417_v5, %v398_v36  ;;  %v436_v10 = vadd.f32 %v434_v6, %v406_v38  ;;  %v1114_v5 = vld [vmem:[#allocation11 + $0xc4] sm:$0xf0]  ;;  %v1097_v6 = vld [vmem:[#allocation11 + $0x44] sm:$0xf]  ;;  %v955_v16 = vld [vmem:[#allocation11 + $0x30] sm:$0xf] }
  0xc9   :  { %v1040_v44 = vor.u32 %v1115_v53, %v1037_v54  ;;  %v1028_v26 = vor.u32 %v1114_v5, %v1027_v1  ;;  %v968_v27 = vor.u32 %v1097_v6, %v965_v9  ;;  %v465_v35 = vmul.f32 %v1410_v56, %v456_v60  ;;  %v1111_v38 = vld [vmem:[#allocation11 + $0xb4] sm:$0xf]  ;;  %v1094_v56 = vld [vmem:[#allocation11 + $0x24] sm:$0xf0]  ;;  %v939_v6 = vld [vmem:[#allocation11 + $0x10] sm:$0xf] }
  0xca   :  { %v420_v2 = vadd.f32 %v418_v18, %v399_v11  ;;  %v432_v3 = vsub.f32 %v419_v52, %v430_v45  ;;  %v437_v4 = vadd.f32 %v435_v25, %v407_v51  ;;  %v440_v20 = vadd.f32 %v438_v59, %v436_v10  ;;  %v1011_v10 = vld [vmem:[#allocation11 + $0xa0] sm:$0xf]  ;;  %v1110_v53 = vld [vmem:[#allocation11 + $0xa4] sm:$0xf0]  ;;  %v1093_v59 = vld [vmem:[#allocation11 + $0x24] sm:$0xf] }
  0xcb   :  { %769 = vmatpush.bf16.msrb.mxu3 %v1040_v44  ;;  %v964_v25 = vor.u32 %v1098_v62, %v963_v57  ;;  %v490_v37 = vperm.slane %v1433_v19, 3  ;;  %744 = vmatpush.bf16.msrb.mxu1 %v1028_v26  ;;  %v1032_v41 = vor.u32 %v1113_v47, %v1029_v15  ;;  %v956_v45 = vor.u32 %v1096_v22, %v955_v16  ;;  %v1092_v9 = vld [vmem:[#allocation11 + $0x14] sm:$0xf0]  ;;  %v1091_v16 = vld [vmem:[#allocation11 + $0x14] sm:$0xf] }
  0xcc   :  { %v433_v18 = vsub.f32 %v420_v2, %v431_v58  ;;  %v441_v21 = vadd.f32 %v439_v8, %v437_v4  ;;  %v453_v39 = vadd.f32 %v1428_v14, %v432_v3  ;;  %v1021_v14 = vld [vmem:[#allocation11 + $0xb8] sm:$0xf0]  ;;  %v470_v51 = vadd.f32 %v1443_v31, %v440_v20  ;;  %757 = vmatpush.bf16.msrb.mxu2 %v968_v27  ;;  %v949_v2 = vld [vmem:[#allocation11 + $0x28] sm:$0xf0]  ;;  %v1109_v3 = vld [vmem:[#allocation11 + $0xa4] sm:$0xf] }
  0xcd   :  { %731 = vmatpush.bf16.msrb.mxu0 %v964_v25  ;;  %v960_v57 = vor.u32 %v1095_v28, %v957_v33  ;;  %v1024_v58 = vor.u32 %v1111_v38, %v1021_v14  ;;  %v472_v62 = vmul.f32 %v455_v46, %v1407_v55  ;;  %v1013_v4 = vld [vmem:[#allocation11 + $0xa8] sm:$0xf0]  ;;  %v948_v8 = vor.u32 %v1094_v56, %v947_v50  ;;  %v1005_v20 = vld [vmem:[#allocation11 + $0x98] sm:$0xf0]  ;;  %v1090_v25 = vld [vmem:[#allocation11 + $0x4] sm:$0xf0] }
  0xce   :  { %v454_v34 = vadd.f32 %v452_v29, %v433_v18  ;;  %v466_v36 = vsub.f32 %v453_v39, %v464_v12  ;;  %v498_v29 = vmul.f32 %v1420_v0, %v489_v61  ;;  %v471_v54 = vadd.f32 %v1446_v32, %v441_v21  ;;  %v1003_v12 = vld [vmem:[#allocation11 + $0x90] sm:$0xf]  ;;  %v941_v18 = vld [vmem:[#allocation11 + $0x18] sm:$0xf0]  ;;  %v995_v26 = vld [vmem:[#allocation11 + $0x80] sm:$0xf] }
  0xcf   :  { %770 = vmatpush.bf16.msrb.mxu3 %v1032_v41  ;;  %v473_v32 = vmul.f32 %v456_v60, %v1407_v55  ;;  %745 = vmatpush.bf16.msrb.mxu1 %v1020_v48  ;;  %v1012_v5 = vor.u32 %v1110_v53, %v1011_v10  ;;  %v474_v46 = vadd.f32 %v472_v62, %v470_v51  ;;  %v1107_v60 = vld [vmem:[#allocation11 + $0x94] sm:$0xf]  ;;  %v1106_v27 = vld [vmem:[#allocation11 + $0x84] sm:$0xf0]  ;;  %v1089_v33 = vld [vmem:[#allocation11 + $0x4] sm:$0xf] }
  0xd0   :  { %v467_v11 = vsub.f32 %v454_v34, %v465_v35  ;;  %v487_v52 = vadd.f32 %v485_v40, %v466_v36  ;;  %v499_v40 = vmul.f32 %v1420_v0, %v490_v37  ;;  %758 = vmatpush.bf16.msrb.mxu2 %v960_v57  ;;  %v952_v47 = vor.u32 %v1093_v59, %v949_v2  ;;  %v997_v34 = vld [vmem:[#allocation11 + $0x88] sm:$0xf0] }
  0xd1   :  { %732 = vmatpush.bf16.msrb.mxu0 %v956_v45  ;;  %v475_v44 = vadd.f32 %v473_v32, %v471_v54  ;;  %v1016_v15 = vor.u32 %v1109_v3, %v1013_v4  ;;  %v502_v55 = vmul.f32 %v1420_v0, %v476_v49  ;;  %v503_v21 = vmul.f32 %v1420_v0, %v477_v43  ;;  %v933_v0 = vld [vmem:[#allocation11 + $0x8] sm:$0xf0]  ;;  %v1105_v43 = vld [vmem:[#allocation11 + $0x84] sm:$0xf] }
  0xd2   :  { %v488_v31 = vadd.f32 %v486_v42, %v467_v11  ;;  %v500_v1 = vsub.f32 %v487_v52, %v498_v29  ;;  %v940_v39 = vor.u32 %v1092_v9, %v939_v6  ;;  %v1004_v22 = vor.u32 %v1108_v13, %v1003_v12 }
  0xd3   :  { %771 = vmatpush.bf16.msrb.mxu3 %v1024_v58  ;;  %746 = vmatpush.bf16.msrb.mxu1 %v1012_v5  ;;  %v504_v24 = vadd.f32 %v502_v55, %v474_v46  ;;  %v505_v28 = vadd.f32 %v503_v21, %v475_v44  ;;  %v944_v17 = vor.u32 %v1091_v16, %v941_v18 }
  0xd4   :  { %v501_v42 = vsub.f32 %v488_v31, %v499_v40  ;;  %512 = vst [vmem:[#allocation1] ss:$2 sm:$0xff] %v500_v1  ;;  %759 = vmatpush.bf16.msrb.mxu2 %v952_v47  ;;  %v1008_v49 = vor.u32 %v1107_v60, %v1005_v20  ;;  %v506_v30 = vmul.f32 %v489_v61, %v1416_v63 }
  0xd5   :  { %733 = vmatpush.bf16.msrb.mxu0 %v948_v8  ;;  %v507_v35 = vmul.f32 %v490_v37, %v1416_v63  ;;  %v932_v36 = vor.u32 %v1090_v25, %v931_v23  ;;  %v996_v38 = vor.u32 %v1106_v27, %v995_v26  ;;  %v936_v48 = vor.u32 %v1089_v33, %v933_v0 }
  0xd6   :  { %514 = vst [vmem:[#allocation1 + $0x1] ss:$2 sm:$0xff] %v501_v42  ;;  %v508_v14 = vadd.f32 %v506_v30, %v504_v24  ;;  %v1000_v50 = vor.u32 %v1105_v43, %v997_v34 }
  0xd7   :  { %772 = vmatpush.bf16.msrb.mxu3 %v1016_v15  ;;  %747 = vmatpush.bf16.msrb.mxu1 %v1004_v22  ;;  %v509_v41 = vadd.f32 %v507_v35, %v505_v28 }
  0xd8   :  { %760 = vmatpush.bf16.msrb.mxu2 %v944_v17 }
  0xd9   :  { %734 = vmatpush.bf16.msrb.mxu0 %v940_v39 }
  0xdb   :  { %773 = vmatpush.bf16.msrb.mxu3 %v1008_v49  ;;  %748 = vmatpush.bf16.msrb.mxu1 %v996_v38 }
  0xdc   :  { %761 = vmatpush.bf16.msrb.mxu2 %v936_v48 }
  0xdd   :  { %v515_v45 = vld.sshfl [vmem:[#allocation1] sm:$0xff pattern:$0x75316420]  ;;  %735 = vmatpush.bf16.msrb.mxu0 %v932_v36 }
  0xde   :  { %v517_v7 = vpack.c.bf16 %v515_v45, %v515_v45  ;;  %521 = vst [vmem:[#allocation1] ss:$2 sm:$0xff] %v508_v14 }
  0xdf   :  { %523 = vst [vmem:[#allocation1 + $0x1] ss:$2 sm:$0xff] %v509_v41  ;;  %774 = vmatpush.bf16.msrb.mxu3 %v1000_v50 }
  0xe0   :  { %518 = vst [vmem:[#allocation2] sm:$0xf] %v517_v7 }
  0xe6   :  { %v524_v63 = vld.sshfl [vmem:[#allocation1] sm:$0xff pattern:$0x75316420] }
  0xe7   :  { %v526_v19 = vpack.c.bf16 %v524_v63, %v524_v63 }
  0xe9   :  { %527 = vst [vmem:[#allocation2 + $0x4] sm:$0xf] %v526_v19 }
  0xf0   :  { %v528_v61 = vld [vmem:[#allocation2] sm:$0xff] }
  0xf1   :  { %v562_v37 = vunpack.c.l.b16 %v528_v61  ;;  %v563_v11 = vunpack.c.h.b16 %v528_v61 }
  0xf3   :  { %v564_v51 = vpack.c.b16 %v562_v37, %v562_v37  ;;  %v565_v52 = vpack.c.b16 %v563_v11, %v563_v11 }
  0xf5   :  { %736 = vmatmul.bf16.vlgmr.msrb.gmra.mxu0 %v564_v51  ;;  %749 = vmatmul.bf16.vlgmr.msrb.gmra.mxu1 %v565_v52 }
  0xf6   :  { %762 = vmatmul.bf16.vlgmr.msrb.gmra.mxu2 %v564_v51  ;;  %775 = vmatmul.bf16.vlgmr.msrb.gmra.mxu3 %v565_v52 }
 0x172   :  { %v737_v29 = vpop.f32.mrf.mxu0  ;;  %v750_v56 = vpop.f32.mrf.mxu1 }
 0x173   :  { %v751_v10 = vadd.f32 %v750_v56, %v737_v29 }
 0x175   :  { %780 = vst [vmem:[#allocation12] sm:$0xff] %v751_v10 }
 0x179   :  { %v763_v53 = vpop.f32.mrf.mxu2  ;;  %v776_v54 = vpop.f32.mrf.mxu3 }
 0x17a   :  { %v777_v57 = vadd.f32 %v776_v54, %v763_v53  ;;  %v739_v58 = vpop.f32.mrf.mxu0  ;;  %v752_v59 = vpop.f32.mrf.mxu1 }
 0x17c   :  { %781 = vst [vmem:[#allocation12 + $0x8] sm:$0xff] %v777_v57 }
 0x17d   :  { %792 = dma.vmem_to_hbm [thread:$0]  %s788_s4, 256, %s790_s21, [#allocation5]  }
 0x181   :  { %v765_v62 = vpop.f32.mrf.mxu2  ;;  %v778_v31 = vpop.f32.mrf.mxu3 }
 0x182   :  { %1281 = dma.done.wait [#allocation5], 256  }
 0x183   :  { %1282 = vsyncadd [#allocation5], 4294967040 }
 0x184   :  { %797 = vsyncpa [#allocation4], 1 }
 0x185   :  { %798 = vsyncpa [#allocation7], 1 }
 0x186   :  { %799 = vsyncpa [#allocation10], 1 }
 0x187   :  { %800 = vsyncpa [#allocation5], 1 }

// kernel: tpu_custom_call.1
= control target key start
LH: loop header
LB: loop body
LE: loop exit
PB: predicated region body
PF: predicated region fallthrough
CT: control target
= control target key end

     0   :  { %10 = vsyncpa [#allocation4], 0  ;;  %s1502_s0 = inlined_call_operand.hbm [shape: bf16[8,256], index: 0, kind: input, shape index: {}]   ;;  %s1503_s1 = inlined_call_operand.hbm [shape: bf16[256,256], index: 1, kind: input, shape index: {}]   ;;  %s1504_s2 = inlined_call_operand.hbm [shape: f32[4,4,128], index: 2, kind: input, shape index: {}]   ;;  %s1505_s3 = inlined_call_operand.hbm [shape: f32[4,4,128], index: 3, kind: input, shape index: {}]   ;;  %s1506_s4 = inlined_call_operand.hbm [shape: bf16[256,256], index: 4, kind: input, shape index: {}]   ;;  %s1507_s5 = inlined_call_operand.hbm [shape: f32[8,256], index: 5, kind: output, shape index: {}]  }
   0x1   :  { %11 = vsyncpa [#allocation7], 0 }
   0x2   :  { %12 = vsyncpa [#allocation10], 0  ;;  %s29_s20 = sshll.u32 %s1503_s1, 4  ;;  %s30_s20 = int_to_ptr.hbm [resolvable:$true] %s29_s20 }
   0x3   :  { %13 = vsyncpa [#allocation5], 0  ;;  %s1283_s21 = smov [#allocation6]   ;;  %s1284_s23 = smov 128  }
   0x4   :  { %s31_s22 = sshll.u32 %s1283_s21, 4  ;;  %s1285_s24 = smov 8   ;;  %s32_s22 = int_to_ptr.vmem [resolvable:$true] %s31_s22 }
   0x5   :  { %37 = dma.hbm_to_vmem [thread:$0]  %s30_s20, 4096, %s32_s22, [#allocation7], %s1284_s23, %s1284_s23, %s1285_s24  }
   0x6   :  { %s55_s27 = sshll.u32 %s1505_s3, 4  ;;  %s1286_s28 = smov [#allocation9]   ;;  %s56_s27 = int_to_ptr.hbm [resolvable:$true] %s55_s27 }
   0x7   :  { %s57_s29 = sshll.u32 %s1286_s28, 4  ;;  %s19_s6 = sshll.u32 %s1502_s0, 4  ;;  %s58_s29 = int_to_ptr.vmem [resolvable:$true] %s57_s29  ;;  %s20_s6 = int_to_ptr.hbm [resolvable:$true] %s19_s6 }
   0x8   :  { %s1287_s7 = smov 64   ;;  %s1288_s8 = smov 4  }
   0x9   :  { %63 = dma.hbm_to_vmem [thread:$0]  %s56_s27, 256, %s58_s29, [#allocation10], %s1287_s7, %s1287_s7, %s1288_s8  }
   0xa   :  { %s42_s11 = sshll.u32 %s1504_s2, 4  ;;  %s1289_s12 = smov [#allocation3]   ;;  %s43_s11 = int_to_ptr.hbm [resolvable:$true] %s42_s11 }
   0xb   :  { %s21_s13 = sshll.u32 %s1289_s12, 4  ;;  %s1290_s3 = smov [#allocation8]   ;;  %s22_s13 = int_to_ptr.vmem [resolvable:$true] %s21_s13 }
   0xc   :  { %24 = dma.hbm_to_vmem [thread:$0]  %s20_s6, 128, %s22_s13, [#allocation4]  }
   0xd   :  { %s44_s14 = sshll.u32 %s1290_s3, 4  ;;  %s68_s0 = sshll.u32 %s1506_s4, 4  ;;  %s45_s14 = int_to_ptr.vmem [resolvable:$true] %s44_s14  ;;  %s69_s0 = int_to_ptr.hbm [resolvable:$true] %s68_s0 }
   0xe   :  { %50 = dma.hbm_to_vmem [thread:$0]  %s43_s11, 256, %s45_s14, [#allocation7], %s1287_s7, %s1287_s7, %s1288_s8  }
   0xf   :  { %s1291_s17 = smov [#allocation11]  }
  0x10   :  { %s70_s18 = sshll.u32 %s1291_s17, 4  ;;  %s71_s18 = int_to_ptr.vmem [resolvable:$true] %s70_s18 }
  0x11   :  { %76 = dma.hbm_to_vmem [thread:$0]  %s69_s0, 4096, %s71_s18, [#allocation10], %s1284_s23, %s1284_s23, %s1285_s24  }
  0x12   :  { %1275 = dma.done.wait [#allocation4], 128  }
  0x13   :  { %1276 = vsyncadd [#allocation4], 4294967168 }
  0x14   :  { %1277 = dma.done.wait [#allocation7], 4352  }
  0x15   :  { %1278 = vsyncadd [#allocation7], 4294962944 }
  0x16   :  { %1279 = dma.done.wait [#allocation10], 4352  }
  0x17   :  { %1280 = vsyncadd [#allocation10], 4294962944  ;;  %v859_v0 = vld [vmem:[#allocation6 + $0x70] sm:$0xf]  ;;  %v1072_v1 = vld [vmem:[#allocation6 + $0x74] sm:$0xf0] }
  0x18   :  { %v923_v2 = vld [vmem:[#allocation6 + $0xf0] sm:$0xf]  ;;  %v860_v3 = vor.u32 %v1072_v1, %v859_v0  ;;  %v1088_v4 = vld [vmem:[#allocation6 + $0xf4] sm:$0xf0]  ;;  %v1071_v5 = vld [vmem:[#allocation6 + $0x74] sm:$0xf] }
  0x19   :  { %v861_v6 = vld [vmem:[#allocation6 + $0x78] sm:$0xf0]  ;;  %v924_v7 = vor.u32 %v1088_v4, %v923_v2  ;;  %v1087_v9 = vld [vmem:[#allocation6 + $0xf4] sm:$0xf]  ;;  %v851_v11 = vld [vmem:[#allocation6 + $0x60] sm:$0xf] }
  0x1a   :  { %v864_v8 = vor.u32 %v1071_v5, %v861_v6  ;;  %v925_v10 = vld [vmem:[#allocation6 + $0xf8] sm:$0xf0]  ;;  %297 = vmatpush.bf16.msra.mxu0 %v860_v3  ;;  %v1070_v13 = vld [vmem:[#allocation6 + $0x64] sm:$0xf0]  ;;  %v915_v14 = vld [vmem:[#allocation6 + $0xe0] sm:$0xf] }
  0x1b   :  { %v928_v12 = vor.u32 %v1087_v9, %v925_v10  ;;  %v1086_v15 = vld [vmem:[#allocation6 + $0xe4] sm:$0xf0]  ;;  %310 = vmatpush.bf16.msra.mxu1 %v924_v7  ;;  %v852_v16 = vor.u32 %v1070_v13, %v851_v11  ;;  %v1069_v18 = vld [vmem:[#allocation6 + $0x64] sm:$0xf]  ;;  %v853_v19 = vld [vmem:[#allocation6 + $0x68] sm:$0xf0] }
  0x1c   :  { %323 = vmatpush.bf16.msra.mxu2 %v864_v8  ;;  %v916_v17 = vor.u32 %v1086_v15, %v915_v14  ;;  %v1085_v20 = vld [vmem:[#allocation6 + $0xe4] sm:$0xf]  ;;  %v856_v21 = vor.u32 %v1069_v18, %v853_v19  ;;  %v917_v22 = vld [vmem:[#allocation6 + $0xe8] sm:$0xf0]  ;;  %v843_v23 = vld [vmem:[#allocation6 + $0x50] sm:$0xf] }
  0x1d   :  { %336 = vmatpush.bf16.msra.mxu3 %v928_v12  ;;  %v1068_v24 = vld [vmem:[#allocation6 + $0x54] sm:$0xf0]  ;;  %v920_v25 = vor.u32 %v1085_v20, %v917_v22  ;;  %v907_v26 = vld [vmem:[#allocation6 + $0xd0] sm:$0xf]  ;;  %v1067_v28 = vld [vmem:[#allocation6 + $0x54] sm:$0xf] }
  0x1e   :  { %v1084_v27 = vld [vmem:[#allocation6 + $0xd4] sm:$0xf0]  ;;  %298 = vmatpush.bf16.msra.mxu0 %v852_v16  ;;  %v844_v29 = vor.u32 %v1068_v24, %v843_v23  ;;  %v845_v30 = vld [vmem:[#allocation6 + $0x58] sm:$0xf0]  ;;  %v1083_v31 = vld [vmem:[#allocation6 + $0xd4] sm:$0xf] }
  0x1f   :  { %v909_v32 = vld [vmem:[#allocation6 + $0xd8] sm:$0xf0]  ;;  %311 = vmatpush.bf16.msra.mxu1 %v916_v17  ;;  %v908_v33 = vor.u32 %v1084_v27, %v907_v26  ;;  %v848_v34 = vor.u32 %v1067_v28, %v845_v30  ;;  %v835_v35 = vld [vmem:[#allocation6 + $0x40] sm:$0xf]  ;;  %v1066_v36 = vld [vmem:[#allocation6 + $0x44] sm:$0xf0] }
  0x20   :  { %324 = vmatpush.bf16.msra.mxu2 %v856_v21  ;;  %v899_v37 = vld [vmem:[#allocation6 + $0xc0] sm:$0xf]  ;;  %v912_v38 = vor.u32 %v1083_v31, %v909_v32  ;;  %v1082_v39 = vld [vmem:[#allocation6 + $0xc4] sm:$0xf0]  ;;  %v1065_v40 = vld [vmem:[#allocation6 + $0x44] sm:$0xf]  ;;  %v836_v44 = vor.u32 %v1066_v36, %v835_v35 }
  0x21   :  { %337 = vmatpush.bf16.msra.mxu3 %v920_v25  ;;  %v837_v41 = vld [vmem:[#allocation6 + $0x48] sm:$0xf0]  ;;  %v1081_v42 = vld [vmem:[#allocation6 + $0xc4] sm:$0xf]  ;;  %v900_v45 = vor.u32 %v1082_v39, %v899_v37  ;;  %v827_v47 = vld [vmem:[#allocation6 + $0x30] sm:$0xf] }
  0x22   :  { %v901_v43 = vld [vmem:[#allocation6 + $0xc8] sm:$0xf0]  ;;  %299 = vmatpush.bf16.msra.mxu0 %v844_v29  ;;  %v840_v46 = vor.u32 %v1065_v40, %v837_v41  ;;  %v1064_v48 = vld [vmem:[#allocation6 + $0x34] sm:$0xf0]  ;;  %v891_v49 = vld [vmem:[#allocation6 + $0xb0] sm:$0xf] }
  0x23   :  { %312 = vmatpush.bf16.msra.mxu1 %v908_v33  ;;  %v904_v50 = vor.u32 %v1081_v42, %v901_v43  ;;  %v1080_v51 = vld [vmem:[#allocation6 + $0xb4] sm:$0xf0]  ;;  %v1063_v52 = vld [vmem:[#allocation6 + $0x34] sm:$0xf]  ;;  %v829_v53 = vld [vmem:[#allocation6 + $0x38] sm:$0xf0]  ;;  %v828_v56 = vor.u32 %v1064_v48, %v827_v47 }
  0x24   :  { %325 = vmatpush.bf16.msra.mxu2 %v848_v34  ;;  %v1079_v54 = vld [vmem:[#allocation6 + $0xb4] sm:$0xf]  ;;  %v893_v55 = vld [vmem:[#allocation6 + $0xb8] sm:$0xf0]  ;;  %v892_v57 = vor.u32 %v1080_v51, %v891_v49  ;;  %v832_v58 = vor.u32 %v1063_v52, %v829_v53  ;;  %v819_v59 = vld [vmem:[#allocation6 + $0x20] sm:$0xf] }
  0x25   :  { %338 = vmatpush.bf16.msra.mxu3 %v912_v38  ;;  %v1062_v60 = vld [vmem:[#allocation6 + $0x24] sm:$0xf0]  ;;  %v883_v61 = vld [vmem:[#allocation6 + $0xa0] sm:$0xf]  ;;  %v896_v62 = vor.u32 %v1079_v54, %v893_v55  ;;  %v1061_v0 = vld [vmem:[#allocation6 + $0x24] sm:$0xf] }
  0x26   :  { %300 = vmatpush.bf16.msra.mxu0 %v836_v44  ;;  %v1078_v63 = vld [vmem:[#allocation6 + $0xa4] sm:$0xf0]  ;;  %v821_v1 = vld [vmem:[#allocation6 + $0x28] sm:$0xf0]  ;;  %v1077_v2 = vld [vmem:[#allocation6 + $0xa4] sm:$0xf]  ;;  %v820_v4 = vor.u32 %v1062_v60, %v819_v59 }
  0x27   :  { %313 = vmatpush.bf16.msra.mxu1 %v900_v45  ;;  %v885_v3 = vld [vmem:[#allocation6 + $0xa8] sm:$0xf0]  ;;  %v884_v5 = vor.u32 %v1078_v63, %v883_v61  ;;  %v824_v6 = vor.u32 %v1061_v0, %v821_v1  ;;  %v811_v7 = vld [vmem:[#allocation6 + $0x10] sm:$0xf]  ;;  %v1060_v8 = vld [vmem:[#allocation6 + $0x14] sm:$0xf0] }
  0x28   :  { %326 = vmatpush.bf16.msra.mxu2 %v840_v46  ;;  %v875_v9 = vld [vmem:[#allocation6 + $0x90] sm:$0xf]  ;;  %v888_v10 = vor.u32 %v1077_v2, %v885_v3  ;;  %v1076_v11 = vld [vmem:[#allocation6 + $0x94] sm:$0xf0]  ;;  %v1059_v12 = vld [vmem:[#allocation6 + $0x14] sm:$0xf]  ;;  %v812_v16 = vor.u32 %v1060_v8, %v811_v7 }
  0x29   :  { %339 = vmatpush.bf16.msra.mxu3 %v904_v50  ;;  %v813_v13 = vld [vmem:[#allocation6 + $0x18] sm:$0xf0]  ;;  %v1075_v14 = vld [vmem:[#allocation6 + $0x94] sm:$0xf]  ;;  %v876_v18 = vor.u32 %v1076_v11, %v875_v9  ;;  %v803_v20 = vld [vmem:[#allocation6] sm:$0xf] }
  0x2a   :  { %301 = vmatpush.bf16.msra.mxu0 %v828_v56  ;;  %v877_v15 = vld [vmem:[#allocation6 + $0x98] sm:$0xf0]  ;;  %v816_v19 = vor.u32 %v1059_v12, %v813_v13  ;;  %v1058_v21 = vld [vmem:[#allocation6 + $0x4] sm:$0xf0]  ;;  %v867_v22 = vld [vmem:[#allocation6 + $0x80] sm:$0xf] }
  0x2b   :  { %314 = vmatpush.bf16.msra.mxu1 %v892_v57  ;;  %v97_v17 = vld [vmem:[#allocation3] sm:$0xff]  ;;  %v880_v23 = vor.u32 %v1075_v14, %v877_v15  ;;  %v1074_v24 = vld [vmem:[#allocation6 + $0x84] sm:$0xf0]  ;;  %v1057_v25 = vld [vmem:[#allocation6 + $0x4] sm:$0xf]  ;;  %v804_v30 = vor.u32 %v1058_v21, %v803_v20  ;;  %vm370_vm0 = vcmask 1041409  }
  0x2c   :  { %327 = vmatpush.bf16.msra.mxu2 %v832_v58  ;;  %v805_v26 = vld [vmem:[#allocation6 + $0x8] sm:$0xf0]  ;;  %v1073_v27 = vld [vmem:[#allocation6 + $0x84] sm:$0xf]  ;;  %v131_v29 = vunpack.c.l.b16 %v97_v17  ;;  %v132_v31 = vunpack.c.h.b16 %v97_v17  ;;  %v868_v32 = vor.u32 %v1074_v24, %v867_v22  ;;  %v354_v38 = vld [vmem:[#allocation9 + $0x4] sm:$0xf] }
  0x2d   :  { %340 = vmatpush.bf16.msra.mxu3 %v896_v62  ;;  %v869_v28 = vld [vmem:[#allocation6 + $0x88] sm:$0xf0]  ;;  %v808_v33 = vor.u32 %v1057_v25, %v805_v26  ;;  %v350_v37 = vld [vmem:[#allocation8 + $0x4] sm:$0xf]  ;;  %v1344_v39 = vld [vmem:[#allocation8 + $0x8] sm:$0xf] }
  0x2e   :  { %302 = vmatpush.bf16.msra.mxu0 %v820_v4  ;;  %v872_v34 = vor.u32 %v1073_v27, %v869_v28  ;;  %v133_v35 = vpack.c.b16 %v131_v29, %v131_v29  ;;  %v134_v36 = vpack.c.b16 %v132_v31, %v132_v31  ;;  %v369_v40 = vrot.slane %v350_v37, 7  ;;  %v349_v41 = vld [vmem:[#allocation8] sm:$0xf]  ;;  %v1346_v42 = vld [vmem:[#allocation9 + $0x8] sm:$0xf]  ;;  %s1292_s2 = smov [#allocation12]  }
  0x2f   :  { %315 = vmatpush.bf16.msra.mxu1 %v884_v5  ;;  %v389_v43 = vrot.slane %v354_v38, 7  ;;  %v1348_v44 = vld [vmem:[#allocation8 + $0xc] sm:$0xf]  ;;  %v353_v45 = vld [vmem:[#allocation9] sm:$0xf]  ;;  %v372_v46 = vrot.slane %v1344_v39, 6 }
  0x30   :  { %328 = vmatpush.bf16.msra.mxu2 %v824_v6  ;;  %v1351_v47 = vld [vmem:[#allocation9 + $0xc] sm:$0xf]  ;;  %v371_v48 = vsel %vm370_vm0, %v369_v40, %v349_v41  ;;  %vm373_vm1 = vcmask 1042434   ;;  %v391_v49 = vrot.slane %v1346_v42, 6  ;;  %v410_v50 = vrot.slane %v349_v41, 1  ;;  %s787_s4 = sshll.u32 %s1292_s2, 4  ;;  %s788_s4 = int_to_ptr.vmem [resolvable:$true] %s787_s4 }
  0x31   :  { %341 = vmatpush.bf16.msra.mxu3 %v888_v10  ;;  %v390_v51 = vsel %vm370_vm0, %v389_v43, %v353_v45  ;;  %v375_v52 = vrot.slane %v1348_v44, 5  ;;  %v374_v53 = vsel %vm373_vm1, %v372_v46, %v371_v48  ;;  %vm376_vm2 = vcmask 1043459   ;;  %v987_v14 = vld [vmem:[#allocation11 + $0x70] sm:$0xf]  ;;  %v1104_v15 = vld [vmem:[#allocation11 + $0x74] sm:$0xf0] }
  0x32   :  { %303 = vmatpush.bf16.msra.mxu0 %v812_v16  ;;  %v393_v54 = vrot.slane %v1351_v47, 5  ;;  %v412_v55 = vrot.slane %v1344_v39, 7  ;;  %v392_v56 = vsel %vm373_vm1, %v391_v49, %v390_v51  ;;  %v411_v57 = vsel %vm370_vm0, %v350_v37, %v410_v50  ;;  %v1051_v16 = vld [vmem:[#allocation11 + $0xf0] sm:$0xf]  ;;  %v1120_v21 = vld [vmem:[#allocation11 + $0xf4] sm:$0xf0] }
  0x33   :  { %316 = vmatpush.bf16.msra.mxu1 %v876_v18  ;;  %v414_v58 = vrot.slane %v1348_v44, 6  ;;  %v423_v59 = vrot.slane %v353_v45, 1  ;;  %v444_v60 = vrot.slane %v349_v41, 2  ;;  %v445_v61 = vrot.slane %v350_v37, 1  ;;  %v1103_v22 = vld [vmem:[#allocation11 + $0x74] sm:$0xf] }
  0x34   :  { %329 = vmatpush.bf16.msra.mxu2 %v816_v19  ;;  %v457_v62 = vrot.slane %v353_v45, 2  ;;  %v458_v63 = vrot.slane %v354_v38, 1  ;;  %v478_v0 = vrot.slane %v349_v41, 3  ;;  %v479_v1 = vrot.slane %v350_v37, 2  ;;  %v1119_v28 = vld [vmem:[#allocation11 + $0xf4] sm:$0xf] }
  0x35   :  { %342 = vmatpush.bf16.msra.mxu3 %v880_v23  ;;  %v491_v2 = vrot.slane %v353_v45, 3  ;;  %v492_v3 = vrot.slane %v354_v38, 2  ;;  %v425_v5 = vrot.slane %v1346_v42, 7  ;;  %v427_v6 = vrot.slane %v1351_v47, 6  ;;  %v989_v23 = vld [vmem:[#allocation11 + $0x78] sm:$0xf0] }
  0x36   :  { %304 = vmatpush.bf16.msra.mxu0 %v804_v30  ;;  %v481_v7 = vrot.slane %v1344_v39, 1  ;;  %v494_v8 = vrot.slane %v1346_v42, 1  ;;  %v1368_v10 = vsel %vm376_vm2, %v375_v52, %v374_v53  ;;  %v1371_v11 = vsel %vm376_vm2, %v393_v54, %v392_v56  ;;  %v1053_v29 = vld [vmem:[#allocation11 + $0xf8] sm:$0xf0]  ;;  %v979_v45 = vld [vmem:[#allocation11 + $0x60] sm:$0xf] }
  0x37   :  { %317 = vmatpush.bf16.msra.mxu1 %v868_v32  ;;  %v413_v12 = vsel %vm373_vm1, %v412_v55, %v411_v57  ;;  %v424_v13 = vsel %vm370_vm0, %v354_v38, %v423_v59  ;;  %v446_v18 = vsel %vm370_vm0, %v445_v61, %v444_v60  ;;  %v459_v19 = vsel %vm370_vm0, %v458_v63, %v457_v62  ;;  %v1102_v46 = vld [vmem:[#allocation11 + $0x64] sm:$0xf0]  ;;  %v1043_v51 = vld [vmem:[#allocation11 + $0xe0] sm:$0xf]  ;;  %v1101_v59 = vld [vmem:[#allocation11 + $0x64] sm:$0xf] }
  0x38   :  { %330 = vmatpush.bf16.msra.mxu2 %v808_v33  ;;  %v988_v20 = vor.u32 %v1104_v15, %v987_v14  ;;  %v480_v24 = vsel %vm370_vm0, %v479_v1, %v478_v0  ;;  %v493_v25 = vsel %vm370_vm0, %v492_v3, %v491_v2  ;;  %v1052_v26 = vor.u32 %v1120_v21, %v1051_v16  ;;  %v1118_v52 = vld [vmem:[#allocation11 + $0xe4] sm:$0xf0]  ;;  %v981_v60 = vld [vmem:[#allocation11 + $0x68] sm:$0xf0]  ;;  %v1117_v2 = vld [vmem:[#allocation11 + $0xe4] sm:$0xf] }
  0x39   :  { %343 = vmatpush.bf16.msra.mxu3 %v872_v34  ;;  %305 = vmatmul.bf16.vlgmr.msra.gmra.mxu0 %v133_v35  ;;  %v992_v27 = vor.u32 %v1103_v22, %v989_v23  ;;  %v426_v31 = vsel %vm373_vm1, %v425_v5, %v424_v13  ;;  %v448_v32 = vrot.slane %v1348_v44, 7  ;;  %v461_v33 = vrot.slane %v1351_v47, 7  ;;  %v1045_v3 = vld [vmem:[#allocation11 + $0xe8] sm:$0xf0]  ;;  %v1116_v13 = vld [vmem:[#allocation11 + $0xd4] sm:$0xf0] }
  0x3a   :  { %318 = vmatmul.bf16.vlgmr.msra.gmra.mxu1 %v134_v36  ;;  %728 = vmatpush.bf16.msrb.mxu0 %v988_v20  ;;  %v1056_v37 = vor.u32 %v1119_v28, %v1053_v29  ;;  %v482_v41 = vsel %vm373_vm1, %v481_v7, %v480_v24  ;;  %v495_v43 = vsel %vm373_vm1, %v494_v8, %v493_v25  ;;  %s789_s21 = sshll.u32 %s1507_s5, 4  ;;  %s790_s21 = int_to_ptr.hbm [resolvable:$true] %s789_s21 }
  0x3b   :  { %331 = vmatmul.bf16.vlgmr.msra.gmra.mxu2 %v133_v35  ;;  %v447_v35 = vsel %vm373_vm1, %v1344_v39, %v446_v18  ;;  %741 = vmatpush.bf16.msrb.mxu1 %v1052_v26  ;;  %v1398_v39 = vsel %vm376_vm2, %v414_v58, %v413_v12  ;;  %v1416_v63 = vsel %vm376_vm2, %v1348_v44, %v482_v41  ;;  %v1035_v12 = vld [vmem:[#allocation11 + $0xd0] sm:$0xf] }
  0x3c   :  { %344 = vmatmul.bf16.vlgmr.msra.gmra.mxu3 %v134_v36  ;;  %v460_v36 = vsel %vm373_vm1, %v1346_v42, %v459_v19  ;;  %754 = vmatpush.bf16.msrb.mxu2 %v992_v27  ;;  %v1401_v42 = vsel %vm376_vm2, %v427_v6, %v426_v31  ;;  %v1407_v55 = vsel %vm376_vm2, %v448_v32, %v447_v35 }
  0x3d   :  { %767 = vmatpush.bf16.msrb.mxu3 %v1056_v37  ;;  %v1410_v56 = vsel %vm376_vm2, %v461_v33, %v460_v36  ;;  %v1420_v0 = vsel %vm376_vm2, %v1351_v47, %v495_v43  ;;  %v980_v8 = vor.u32 %v1102_v46, %v979_v45  ;;  %v1044_v47 = vor.u32 %v1118_v52, %v1043_v51 }
  0x3e   :  { %v984_v15 = vor.u32 %v1101_v59, %v981_v60  ;;  %v1048_v22 = vor.u32 %v1117_v2, %v1045_v3  ;;  %v1036_v24 = vor.u32 %v1116_v13, %v1035_v12 }
  0x3f   :  { %729 = vmatpush.bf16.msrb.mxu0 %v980_v8  ;;  %742 = vmatpush.bf16.msrb.mxu1 %v1044_v47  ;;  %v1113_v47 = vld [vmem:[#allocation11 + $0xc4] sm:$0xf] }
  0x40   :  { %755 = vmatpush.bf16.msrb.mxu2 %v984_v15  ;;  %v1029_v15 = vld [vmem:[#allocation11 + $0xc8] sm:$0xf0] }
  0x41   :  { %768 = vmatpush.bf16.msrb.mxu3 %v1048_v22  ;;  %v1096_v22 = vld [vmem:[#allocation11 + $0x34] sm:$0xf0] }
  0x43   :  { %743 = vmatpush.bf16.msrb.mxu1 %v1036_v24  ;;  %v1112_v24 = vld [vmem:[#allocation11 + $0xb4] sm:$0xf0] }
  0xb6   :  { %v306_v4 = vpop.f32.mrf.mxu0 }
  0xb7   :  { %v319_v9 = vpop.f32.mrf.mxu1 }
  0xb8   :  { %v1375_v17 = vadd.f32 %v319_v9, %v306_v4  ;;  %v971_v4 = vld [vmem:[#allocation11 + $0x50] sm:$0xf]  ;;  %v1100_v9 = vld [vmem:[#allocation11 + $0x54] sm:$0xf0] }
  0xb9   :  { %v972_v23 = vor.u32 %v1100_v9, %v971_v4  ;;  %v965_v9 = vld [vmem:[#allocation11 + $0x48] sm:$0xf0] }
  0xba   :  { %v1382_v30 = vrot.slane %v1375_v17, 4  ;;  %v363_v34 = vperm.slane %v1375_v17, 0  ;;  %v408_v38 = vperm.slane %v1375_v17, 1  ;;  %v442_v40 = vperm.slane %v1375_v17, 2 }
  0xbb   :  { %v476_v49 = vperm.slane %v1375_v17, 3  ;;  %730 = vmatpush.bf16.msrb.mxu0 %v972_v23  ;;  %v1019_v23 = vld [vmem:[#allocation11 + $0xb0] sm:$0xf] }
  0xbc   :  { %v364_v48 = vperm.slane %v1382_v30, 0  ;;  %v409_v53 = vperm.slane %v1382_v30, 1  ;;  %v443_v54 = vperm.slane %v1382_v30, 2  ;;  %v379_v61 = vmul.f32 %v1368_v10, %v363_v34 }
  0xbd   :  { %v400_v62 = vmul.f32 %v1371_v11, %v363_v34  ;;  %v417_v5 = vmul.f32 %v1398_v39, %v408_v38  ;;  %v434_v6 = vmul.f32 %v1401_v42, %v408_v38  ;;  %v1428_v14 = vmul.f32 %v1407_v55, %v442_v40 }
  0xbe   :  { %v332_v50 = vpop.f32.mrf.mxu2  ;;  %v308_v58 = vpop.f32.mrf.mxu0  ;;  %v380_v44 = vmul.f32 %v1368_v10, %v364_v48  ;;  %v401_v16 = vmul.f32 %v1371_v11, %v364_v48  ;;  %v418_v18 = vmul.f32 %v1398_v39, %v409_v53  ;;  %v435_v25 = vmul.f32 %v1401_v42, %v409_v53  ;;  %v1099_v48 = vld [vmem:[#allocation11 + $0x54] sm:$0xf] }
  0xbf   :  { %v345_v57 = vpop.f32.mrf.mxu3  ;;  %v321_v1 = vpop.f32.mrf.mxu1  ;;  %v452_v29 = vmul.f32 %v1407_v55, %v443_v54  ;;  %v1443_v31 = vmul.f32 %v1410_v56, %v442_v40  ;;  %v1446_v32 = vmul.f32 %v1410_v56, %v443_v54  ;;  %v477_v43 = vperm.slane %v1382_v30, 3  ;;  %v1115_v53 = vld [vmem:[#allocation11 + $0xd4] sm:$0xf]  ;;  %v1037_v54 = vld [vmem:[#allocation11 + $0xd8] sm:$0xf0] }
  0xc0   :  { %v1424_v7 = vadd.f32 %v345_v57, %v332_v50  ;;  %v485_v40 = vmul.f32 %v1416_v63, %v476_v49  ;;  %v973_v50 = vld [vmem:[#allocation11 + $0x58] sm:$0xf0]  ;;  %v963_v57 = vld [vmem:[#allocation11 + $0x40] sm:$0xf] }
  0xc1   :  { %v1027_v1 = vld [vmem:[#allocation11 + $0xc0] sm:$0xf]  ;;  %v976_v13 = vor.u32 %v1099_v48, %v973_v50  ;;  %v1020_v48 = vor.u32 %v1112_v24, %v1019_v23 }
  0xc2   :  { %v1433_v19 = vrot.slane %v1424_v7, 4  ;;  %v383_v20 = vperm.slane %v1424_v7, 0  ;;  %v421_v21 = vperm.slane %v1424_v7, 1  ;;  %v455_v46 = vperm.slane %v1424_v7, 2  ;;  %v947_v50 = vld [vmem:[#allocation11 + $0x20] sm:$0xf] }
  0xc3   :  { %756 = vmatpush.bf16.msrb.mxu2 %v976_v13  ;;  %v1108_v13 = vld [vmem:[#allocation11 + $0x94] sm:$0xf0]  ;;  %v931_v23 = vld [vmem:[#allocation11] sm:$0xf] }
  0xc4   :  { %v384_v26 = vperm.slane %v1433_v19, 0  ;;  %v396_v27 = vmul.f32 %v1371_v11, %v383_v20  ;;  %v404_v28 = vmul.f32 %v383_v20, %v1368_v10  ;;  %v422_v33 = vperm.slane %v1433_v19, 1 }
  0xc5   :  { %v430_v45 = vmul.f32 %v1401_v42, %v421_v21  ;;  %v438_v59 = vmul.f32 %v421_v21, %v1398_v39  ;;  %v456_v60 = vperm.slane %v1433_v19, 2  ;;  %v464_v12 = vmul.f32 %v1410_v56, %v455_v46 }
  0xc6   :  { %v334_v34 = vpop.f32.mrf.mxu2  ;;  %v397_v35 = vmul.f32 %v1371_v11, %v384_v26  ;;  %v398_v36 = vsub.f32 %v379_v61, %v396_v27  ;;  %v405_v37 = vmul.f32 %v384_v26, %v1368_v10  ;;  %v406_v38 = vadd.f32 %v404_v28, %v400_v62  ;;  %v1098_v62 = vld [vmem:[#allocation11 + $0x44] sm:$0xf0]  ;;  %v1095_v28 = vld [vmem:[#allocation11 + $0x34] sm:$0xf] }
  0xc7   :  { %v347_v41 = vpop.f32.mrf.mxu3  ;;  %v431_v58 = vmul.f32 %v1401_v42, %v422_v33  ;;  %v489_v61 = vperm.slane %v1424_v7, 3  ;;  %v439_v8 = vmul.f32 %v422_v33, %v1398_v39  ;;  %v486_v42 = vmul.f32 %v1416_v63, %v477_v43  ;;  %v957_v33 = vld [vmem:[#allocation11 + $0x38] sm:$0xf0] }
  0xc8   :  { %v399_v11 = vsub.f32 %v380_v44, %v397_v35  ;;  %v407_v51 = vadd.f32 %v405_v37, %v401_v16  ;;  %v419_v52 = vadd.f32 %v417_v5, %v398_v36  ;;  %v436_v10 = vadd.f32 %v434_v6, %v406_v38  ;;  %v1114_v5 = vld [vmem:[#allocation11 + $0xc4] sm:$0xf0]  ;;  %v1097_v6 = vld [vmem:[#allocation11 + $0x44] sm:$0xf]  ;;  %v955_v16 = vld [vmem:[#allocation11 + $0x30] sm:$0xf] }
  0xc9   :  { %v1040_v44 = vor.u32 %v1115_v53, %v1037_v54  ;;  %v1028_v26 = vor.u32 %v1114_v5, %v1027_v1  ;;  %v968_v27 = vor.u32 %v1097_v6, %v965_v9  ;;  %v465_v35 = vmul.f32 %v1410_v56, %v456_v60  ;;  %v1111_v38 = vld [vmem:[#allocation11 + $0xb4] sm:$0xf]  ;;  %v1094_v56 = vld [vmem:[#allocation11 + $0x24] sm:$0xf0]  ;;  %v939_v6 = vld [vmem:[#allocation11 + $0x10] sm:$0xf] }
  0xca   :  { %v420_v2 = vadd.f32 %v418_v18, %v399_v11  ;;  %v432_v3 = vsub.f32 %v419_v52, %v430_v45  ;;  %v437_v4 = vadd.f32 %v435_v25, %v407_v51  ;;  %v440_v20 = vadd.f32 %v438_v59, %v436_v10  ;;  %v1011_v10 = vld [vmem:[#allocation11 + $0xa0] sm:$0xf]  ;;  %v1110_v53 = vld [vmem:[#allocation11 + $0xa4] sm:$0xf0]  ;;  %v1093_v59 = vld [vmem:[#allocation11 + $0x24] sm:$0xf] }
  0xcb   :  { %769 = vmatpush.bf16.msrb.mxu3 %v1040_v44  ;;  %v964_v25 = vor.u32 %v1098_v62, %v963_v57  ;;  %v490_v37 = vperm.slane %v1433_v19, 3  ;;  %744 = vmatpush.bf16.msrb.mxu1 %v1028_v26  ;;  %v1032_v41 = vor.u32 %v1113_v47, %v1029_v15  ;;  %v956_v45 = vor.u32 %v1096_v22, %v955_v16  ;;  %v1092_v9 = vld [vmem:[#allocation11 + $0x14] sm:$0xf0]  ;;  %v1091_v16 = vld [vmem:[#allocation11 + $0x14] sm:$0xf] }
  0xcc   :  { %v433_v18 = vsub.f32 %v420_v2, %v431_v58  ;;  %v441_v21 = vadd.f32 %v439_v8, %v437_v4  ;;  %v453_v39 = vadd.f32 %v1428_v14, %v432_v3  ;;  %v1021_v14 = vld [vmem:[#allocation11 + $0xb8] sm:$0xf0]  ;;  %v470_v51 = vadd.f32 %v1443_v31, %v440_v20  ;;  %757 = vmatpush.bf16.msrb.mxu2 %v968_v27  ;;  %v949_v2 = vld [vmem:[#allocation11 + $0x28] sm:$0xf0]  ;;  %v1109_v3 = vld [vmem:[#allocation11 + $0xa4] sm:$0xf] }
  0xcd   :  { %731 = vmatpush.bf16.msrb.mxu0 %v964_v25  ;;  %v960_v57 = vor.u32 %v1095_v28, %v957_v33  ;;  %v1024_v58 = vor.u32 %v1111_v38, %v1021_v14  ;;  %v472_v62 = vmul.f32 %v455_v46, %v1407_v55  ;;  %v1013_v4 = vld [vmem:[#allocation11 + $0xa8] sm:$0xf0]  ;;  %v948_v8 = vor.u32 %v1094_v56, %v947_v50  ;;  %v1005_v20 = vld [vmem:[#allocation11 + $0x98] sm:$0xf0]  ;;  %v1090_v25 = vld [vmem:[#allocation11 + $0x4] sm:$0xf0] }
  0xce   :  { %v454_v34 = vadd.f32 %v452_v29, %v433_v18  ;;  %v466_v36 = vsub.f32 %v453_v39, %v464_v12  ;;  %v498_v29 = vmul.f32 %v1420_v0, %v489_v61  ;;  %v471_v54 = vadd.f32 %v1446_v32, %v441_v21  ;;  %v1003_v12 = vld [vmem:[#allocation11 + $0x90] sm:$0xf]  ;;  %v941_v18 = vld [vmem:[#allocation11 + $0x18] sm:$0xf0]  ;;  %v995_v26 = vld [vmem:[#allocation11 + $0x80] sm:$0xf] }
  0xcf   :  { %770 = vmatpush.bf16.msrb.mxu3 %v1032_v41  ;;  %v473_v32 = vmul.f32 %v456_v60, %v1407_v55  ;;  %745 = vmatpush.bf16.msrb.mxu1 %v1020_v48  ;;  %v1012_v5 = vor.u32 %v1110_v53, %v1011_v10  ;;  %v474_v46 = vadd.f32 %v472_v62, %v470_v51  ;;  %v1107_v60 = vld [vmem:[#allocation11 + $0x94] sm:$0xf]  ;;  %v1106_v27 = vld [vmem:[#allocation11 + $0x84] sm:$0xf0]  ;;  %v1089_v33 = vld [vmem:[#allocation11 + $0x4] sm:$0xf] }
  0xd0   :  { %v467_v11 = vsub.f32 %v454_v34, %v465_v35  ;;  %v487_v52 = vadd.f32 %v485_v40, %v466_v36  ;;  %v499_v40 = vmul.f32 %v1420_v0, %v490_v37  ;;  %758 = vmatpush.bf16.msrb.mxu2 %v960_v57  ;;  %v952_v47 = vor.u32 %v1093_v59, %v949_v2  ;;  %v997_v34 = vld [vmem:[#allocation11 + $0x88] sm:$0xf0] }
  0xd1   :  { %732 = vmatpush.bf16.msrb.mxu0 %v956_v45  ;;  %v475_v44 = vadd.f32 %v473_v32, %v471_v54  ;;  %v1016_v15 = vor.u32 %v1109_v3, %v1013_v4  ;;  %v502_v55 = vmul.f32 %v1420_v0, %v476_v49  ;;  %v503_v21 = vmul.f32 %v1420_v0, %v477_v43  ;;  %v933_v0 = vld [vmem:[#allocation11 + $0x8] sm:$0xf0]  ;;  %v1105_v43 = vld [vmem:[#allocation11 + $0x84] sm:$0xf] }
  0xd2   :  { %v488_v31 = vadd.f32 %v486_v42, %v467_v11  ;;  %v500_v1 = vsub.f32 %v487_v52, %v498_v29  ;;  %v940_v39 = vor.u32 %v1092_v9, %v939_v6  ;;  %v1004_v22 = vor.u32 %v1108_v13, %v1003_v12 }
  0xd3   :  { %771 = vmatpush.bf16.msrb.mxu3 %v1024_v58  ;;  %746 = vmatpush.bf16.msrb.mxu1 %v1012_v5  ;;  %v504_v24 = vadd.f32 %v502_v55, %v474_v46  ;;  %v505_v28 = vadd.f32 %v503_v21, %v475_v44  ;;  %v944_v17 = vor.u32 %v1091_v16, %v941_v18 }
  0xd4   :  { %v501_v42 = vsub.f32 %v488_v31, %v499_v40  ;;  %512 = vst [vmem:[#allocation1] ss:$2 sm:$0xff] %v500_v1  ;;  %759 = vmatpush.bf16.msrb.mxu2 %v952_v47  ;;  %v1008_v49 = vor.u32 %v1107_v60, %v1005_v20  ;;  %v506_v30 = vmul.f32 %v489_v61, %v1416_v63 }
  0xd5   :  { %733 = vmatpush.bf16.msrb.mxu0 %v948_v8  ;;  %v507_v35 = vmul.f32 %v490_v37, %v1416_v63  ;;  %v932_v36 = vor.u32 %v1090_v25, %v931_v23  ;;  %v996_v38 = vor.u32 %v1106_v27, %v995_v26  ;;  %v936_v48 = vor.u32 %v1089_v33, %v933_v0 }
  0xd6   :  { %514 = vst [vmem:[#allocation1 + $0x1] ss:$2 sm:$0xff] %v501_v42  ;;  %v508_v14 = vadd.f32 %v506_v30, %v504_v24  ;;  %v1000_v50 = vor.u32 %v1105_v43, %v997_v34 }
  0xd7   :  { %772 = vmatpush.bf16.msrb.mxu3 %v1016_v15  ;;  %747 = vmatpush.bf16.msrb.mxu1 %v1004_v22  ;;  %v509_v41 = vadd.f32 %v507_v35, %v505_v28 }
  0xd8   :  { %760 = vmatpush.bf16.msrb.mxu2 %v944_v17 }
  0xd9   :  { %734 = vmatpush.bf16.msrb.mxu0 %v940_v39 }
  0xdb   :  { %773 = vmatpush.bf16.msrb.mxu3 %v1008_v49  ;;  %748 = vmatpush.bf16.msrb.mxu1 %v996_v38 }
  0xdc   :  { %761 = vmatpush.bf16.msrb.mxu2 %v936_v48 }
  0xdd   :  { %v515_v45 = vld.sshfl [vmem:[#allocation1] sm:$0xff pattern:$0x75316420]  ;;  %735 = vmatpush.bf16.msrb.mxu0 %v932_v36 }
  0xde   :  { %v517_v7 = vpack.c.bf16 %v515_v45, %v515_v45  ;;  %521 = vst [vmem:[#allocation1] ss:$2 sm:$0xff] %v508_v14 }
  0xdf   :  { %523 = vst [vmem:[#allocation1 + $0x1] ss:$2 sm:$0xff] %v509_v41  ;;  %774 = vmatpush.bf16.msrb.mxu3 %v1000_v50 }
  0xe0   :  { %518 = vst [vmem:[#allocation2] sm:$0xf] %v517_v7 }
  0xe6   :  { %v524_v63 = vld.sshfl [vmem:[#allocation1] sm:$0xff pattern:$0x75316420] }
  0xe7   :  { %v526_v19 = vpack.c.bf16 %v524_v63, %v524_v63 }
  0xe9   :  { %527 = vst [vmem:[#allocation2 + $0x4] sm:$0xf] %v526_v19 }
  0xf0   :  { %v528_v61 = vld [vmem:[#allocation2] sm:$0xff] }
  0xf1   :  { %v562_v37 = vunpack.c.l.b16 %v528_v61  ;;  %v563_v11 = vunpack.c.h.b16 %v528_v61 }
  0xf3   :  { %v564_v51 = vpack.c.b16 %v562_v37, %v562_v37  ;;  %v565_v52 = vpack.c.b16 %v563_v11, %v563_v11 }
  0xf5   :  { %736 = vmatmul.bf16.vlgmr.msrb.gmra.mxu0 %v564_v51  ;;  %749 = vmatmul.bf16.vlgmr.msrb.gmra.mxu1 %v565_v52 }
  0xf6   :  { %762 = vmatmul.bf16.vlgmr.msrb.gmra.mxu2 %v564_v51  ;;  %775 = vmatmul.bf16.vlgmr.msrb.gmra.mxu3 %v565_v52 }
 0x172   :  { %v737_v29 = vpop.f32.mrf.mxu0  ;;  %v750_v56 = vpop.f32.mrf.mxu1 }
 0x173   :  { %v751_v10 = vadd.f32 %v750_v56, %v737_v29 }
 0x175   :  { %780 = vst [vmem:[#allocation12] sm:$0xff] %v751_v10 }
 0x179   :  { %v763_v53 = vpop.f32.mrf.mxu2  ;;  %v776_v54 = vpop.f32.mrf.mxu3 }
 0x17a   :  { %v777_v57 = vadd.f32 %v776_v54, %v763_v53  ;;  %v739_v58 = vpop.f32.mrf.mxu0  ;;  %v752_v59 = vpop.f32.mrf.mxu1 }
 0x17c   :  { %781 = vst [vmem:[#allocation12 + $0x8] sm:$0xff] %v777_v57 }
 0x17d   :  { %792 = dma.vmem_to_hbm [thread:$0]  %s788_s4, 256, %s790_s21, [#allocation5]  }
 0x181   :  { %v765_v62 = vpop.f32.mrf.mxu2  ;;  %v778_v31 = vpop.f32.mrf.mxu3 }
 0x182   :  { %1281 = dma.done.wait [#allocation5], 256  }
 0x183   :  { %1282 = vsyncadd [#allocation5], 4294967040 }
 0x184   :  { %797 = vsyncpa [#allocation4], 1 }
 0x185   :  { %798 = vsyncpa [#allocation7], 1 }
 0x186   :  { %799 = vsyncpa [#allocation10], 1 }
 0x187   :  { %800 = vsyncpa [#allocation5], 1 }

</bundles_post_ra>
